<compile_context>
chip_gen: v7x
topology: tpu7x:2x2x1
jax: 0.10.0
libtpu: 0.0.40
codegen_flags: <defaults>
</compile_context>

<pallas_src>
import functools
import math

import jax
import jax.numpy as jnp
from jax.experimental import pallas as pl
from jax.experimental.pallas import tpu as pltpu


# ----------------------------- fused Pallas kernel -------------------------- #

def _groie_layer_kernel(x_ref, bias_ref, wqkv_ref, bqkv_ref, wo_ref, bo_ref,
                        ln1g_ref, ln1b_ref, wi_ref, bi_ref, wo2_ref, bo2_ref,
                        ln2g_ref, ln2b_ref, clsw_ref, clsb_ref,
                        out_ref, ctx_ref, *, B, S, heads, eps):
    """One ensemble member: BERT layer (attn + FFN, post-LN) + padded classifier.

    x_ref:    (1, B*S, H)   activation of the selected encoder layer
    bias_ref: (B, S)        additive attention mask (0 / -10000)
    out_ref:  (1, B*S, LPAD) classifier logits, lane-padded to LPAD
    ctx_ref:  (B*S, H)      VMEM scratch for the merged attention context
    """
    H = x_ref.shape[-1]
    D = H // heads

    x = x_ref[0]                                                    # (M, H)

    # Fused Q/K/V projection; 1/sqrt(D) already folded into the Q weights/bias.
    qkv = jnp.dot(x, wqkv_ref[0], preferred_element_type=jnp.float32) + bqkv_ref[0]
    q = qkv[:, 0:H]
    k = qkv[:, H:2 * H]
    v = qkv[:, 2 * H:3 * H]

    # Per-(batch, head) attention; static unrolled loops (B*heads tiny blocks),
    # results written straight into the (M, H) merged-context scratch so no
    # split/merge transposes ever leave VMEM.
    for b in range(B):
        bias_b = bias_ref[b:b + 1, :]                               # (1, S)
        r0, r1 = b * S, (b + 1) * S
        for h in range(heads):
            c0, c1 = h * D, (h + 1) * D
            q_bh = q[r0:r1, c0:c1]                                  # (S, D)
            k_bh = k[r0:r1, c0:c1]
            v_bh = v[r0:r1, c0:c1]
            s_bh = jnp.dot(q_bh, k_bh.T,
                           preferred_element_type=jnp.float32) + bias_b
            s_bh = s_bh - jnp.max(s_bh, axis=-1, keepdims=True)
            p = jnp.exp(s_bh)
            p = p * pl.reciprocal(jnp.sum(p, axis=-1, keepdims=True), approx=True)
            ctx_ref[r0:r1, c0:c1] = jnp.dot(
                p, v_bh, preferred_element_type=jnp.float32)

    ctx = ctx_ref[...]                                              # (M, H)

    def layer_norm(y, g, b_):
        mu = jnp.mean(y, axis=-1, keepdims=True)
        var = jnp.mean(jnp.square(y - mu), axis=-1, keepdims=True)
        return (y - mu) * jax.lax.rsqrt(var + eps) * g + b_

    # Attention output projection + residual + LN1.
    attn_out = jnp.dot(ctx, wo_ref[0], preferred_element_type=jnp.float32) + bo_ref[0]
    h1 = layer_norm(attn_out + x, ln1g_ref[0], ln1b_ref[0])

    # FFN (gelu) + residual + LN2.
    # TODO(synk): HF BERT uses exact erf gelu; tanh approximation used here.
    inter = jnp.dot(h1, wi_ref[0], preferred_element_type=jnp.float32) + bi_ref[0]
    inter = jax.nn.gelu(inter, approximate=True)
    ffn = jnp.dot(inter, wo2_ref[0], preferred_element_type=jnp.float32) + bo2_ref[0]
    h2 = layer_norm(ffn + h1, ln2g_ref[0], ln2b_ref[0])

    # Classifier (lane-padded to LPAD for a dense, unmasked store).
    logits = jnp.dot(h2, clsw_ref[...], preferred_element_type=jnp.float32) + clsb_ref[...]
    out_ref[0] = logits.astype(out_ref.dtype)


def fused_prehead_classifier(x_stack, attn_bias, packed, *, num_heads, eps=1e-12):
    """x_stack: (count, B*S, H); attn_bias: (B, S). Returns (count, B*S, LPAD)."""
    count, M, H = x_stack.shape
    B, S = attn_bias.shape
    I = packed["wi"].shape[-1]
    LPAD = packed["cls_w"].shape[-1]

    kernel = functools.partial(_groie_layer_kernel, B=B, S=S, heads=num_heads, eps=eps)
    per3 = lambda i: (i, 0, 0)   # per-ensemble-member block
    rep2 = lambda i: (0, 0)      # shared / replicated block

    grid_spec = pltpu.PrefetchScalarGridSpec(
        num_scalar_prefetch=0,
        grid=(count,),
        in_specs=[
            pl.BlockSpec((1, M, H), per3),           # x
            pl.BlockSpec((B, S), rep2),              # attention bias
            pl.BlockSpec((1, H, 3 * H), per3),       # wqkv (scale folded into Q)
            pl.BlockSpec((1, 1, 3 * H), per3),       # bqkv
            pl.BlockSpec((1, H, H), per3),           # wo
            pl.BlockSpec((1, 1, H), per3),           # bo
            pl.BlockSpec((1, 1, H), per3),           # ln1_g
            pl.BlockSpec((1, 1, H), per3),           # ln1_b
            pl.BlockSpec((1, H, I), per3),           # wi
            pl.BlockSpec((1, 1, I), per3),           # bi
            pl.BlockSpec((1, I, H), per3),           # wo2
            pl.BlockSpec((1, 1, H), per3),           # bo2
            pl.BlockSpec((1, 1, H), per3),           # ln2_g
            pl.BlockSpec((1, 1, H), per3),           # ln2_b
            pl.BlockSpec((H, LPAD), rep2),           # cls_w (padded, shared)
            pl.BlockSpec((1, LPAD), rep2),           # cls_b (padded, shared)
        ],
        out_specs=pl.BlockSpec((1, M, LPAD), per3),
        scratch_shapes=[pltpu.VMEM((M, H), jnp.float32)],
    )
    return pl.pallas_call(
        kernel,
        out_shape=jax.ShapeDtypeStruct((count, M, LPAD), jnp.float32),
        grid_spec=grid_spec,
        compiler_params=pltpu.CompilerParams(
            dimension_semantics=("parallel",)),      # independent members -> both TCs on v7x
    )(x_stack, attn_bias,
      packed["wqkv"], packed["bqkv"], packed["wo"], packed["bo"],
      packed["ln1_g"], packed["ln1_b"], packed["wi"], packed["bi"],
      packed["wo2"], packed["bo2"], packed["ln2_g"], packed["ln2_b"],
      packed["cls_w"], packed["cls_b"])


# ------------------------------- CRF (plain JAX) ----------------------------- #

def crf_log_likelihood(p, emissions, tags):
    """Linear-chain CRF log-likelihood (pytorch-crf style, reduction='sum').

    emissions: (T, Bv, L) float; tags: (T, Bv) int; mask == all ones
    (the original module passes no mask to CRF).
    """
    # TODO(synk): the per-timestep chain recursion stays in plain JAX (lax.scan);
    # it is a tiny sequential scan with no clean / profitable Pallas tiling.
    start, end, trans = p["start"], p["end"], p["trans"]
    T, Bv, L = emissions.shape
    batch_idx = jnp.arange(Bv)

    # numerator: score of the gold path
    first_tags = tags[0]
    score0 = start[first_tags] + emissions[0, batch_idx, first_tags]

    def num_step(carry, inp):
        score, prev_tags = carry
        em_t, tags_t = inp
        score = score + trans[prev_tags, tags_t] + em_t[batch_idx, tags_t]
        return (score, tags_t), None

    (score, last_tags), _ = jax.lax.scan(
        num_step, (score0, first_tags), (emissions[1:], tags[1:]))
    numerator = score + end[last_tags]

    # denominator: log partition via forward algorithm
    alpha0 = start[None, :] + emissions[0]

    def den_step(alpha, em_t):
        nxt = jax.scipy.special.logsumexp(
            alpha[:, :, None] + trans[None, :, :] + em_t[:, None, :], axis=1)
        return nxt, None

    alpha, _ = jax.lax.scan(den_step, alpha0, emissions[1:])
    denominator = jax.scipy.special.logsumexp(alpha + end[None, :], axis=-1)

    return jnp.sum(numerator - denominator)


# ------------------------------- forward pass -------------------------------- #

@functools.partial(jax.jit,
                   static_argnames=("count", "num_labels", "num_heads", "seq_view"))
def groie_forward(packed, crf_params, layers, attention_mask, labels, *,
                  count, num_labels, num_heads, seq_view):
    """Mirrors GRoIE.forward.  `seq_view` plays the role of the hard-coded 100."""
    B, S, H = layers[0].shape
    # additive attention bias, BERT convention
    attn_bias = (1.0 - attention_mask.astype(jnp.float32)) * -10000.0      # (B, S)

    # Stack the `count` selected encoder outputs (layers[-i-1]) along a grid axis.
    x_stack = jnp.stack([layers[-i - 1].reshape(B * S, H) for i in range(count)], 0)

    logits_pad = fused_prehead_classifier(x_stack, attn_bias, packed,
                                          num_heads=num_heads)              # (count, B*S, LPAD)
    logits = logits_pad[:, :, :num_labels].reshape(count, B, S, num_labels)
    # dropout == identity (eval / inference mode)

    if labels is not None:
        # ≙ logits.view(100, -1, L) / labels.view(100, -1) — raw row-major view.
        em = logits.reshape(count, seq_view, -1, num_labels)
        tg = labels.reshape(seq_view, -1)
        losses = jax.vmap(crf_log_likelihood, in_axes=(0, 0, None))(crf_params, em, tg)
        total_loss = jnp.sum(losses)
    else:
        total_loss = jnp.zeros(())   # stands in for torch.Tensor(0)

    avg_logits = jnp.sum(logits, axis=0) / count
    return (-total_loss, avg_logits)


# ------------------------------ parameter handling --------------------------- #

def init_params(key, count, hidden, num_heads, inter, num_labels):
    del num_heads  # layout-independent init; head count used at pack/forward time
    keys = iter(jax.random.split(key, count * 12 + 4))

    def nrm(shape, scale=0.02):
        return scale * jax.random.normal(next(keys), shape, jnp.float32)

    pre, crf = [], []
    for _ in range(count):
        pre.append(dict(
            wq=nrm((hidden, hidden)), bq=jnp.zeros((hidden,), jnp.float32),
            wk=nrm((hidden, hidden)), bk=jnp.zeros((hidden,), jnp.float32),
            wv=nrm((hidden, hidden)), bv=jnp.zeros((hidden,), jnp.float32),
            wo=nrm((hidden, hidden)), bo=jnp.zeros((hidden,), jnp.float32),
            ln1_g=jnp.ones((hidden,), jnp.float32),
            ln1_b=jnp.zeros((hidden,), jnp.float32),
            wi=nrm((hidden, inter)), bi=jnp.zeros((inter,), jnp.float32),
            wo2=nrm((inter, hidden)), bo2=jnp.zeros((hidden,), jnp.float32),
            ln2_g=jnp.ones((hidden,), jnp.float32),
            ln2_b=jnp.zeros((hidden,), jnp.float32),
        ))
        crf.append(dict(
            start=nrm((num_labels,), 0.1),
            end=nrm((num_labels,), 0.1),
            trans=nrm((num_labels, num_labels), 0.1),
        ))
    return dict(pre=pre, crf=crf,
                cls_w=nrm((hidden, num_labels)),
                cls_b=jnp.zeros((num_labels,), jnp.float32))


def pack_params(params, *, hidden, num_heads, num_labels, lane_pad=128):
    """Fuse/stack per-member weights for the single fused pallas_call."""
    D = hidden // num_heads
    scale = 1.0 / math.sqrt(D)
    pre = params["pre"]

    def stack(fn):
        return jnp.stack([fn(p) for p in pre], axis=0)

    packed = dict(
        # fold the 1/sqrt(D) attention scale into the Q projection (weight + bias)
        wqkv=stack(lambda p: jnp.concatenate(
            [p["wq"] * scale, p["wk"], p["wv"]], axis=1)),                  # (count, H, 3H)
        bqkv=stack(lambda p: jnp.concatenate(
            [p["bq"] * scale, p["bk"], p["bv"]])[None, :]),                 # (count, 1, 3H)
        wo=stack(lambda p: p["wo"]),
        bo=stack(lambda p: p["bo"][None, :]),
        ln1_g=stack(lambda p: p["ln1_g"][None, :]),
        ln1_b=stack(lambda p: p["ln1_b"][None, :]),
        wi=stack(lambda p: p["wi"]),
        bi=stack(lambda p: p["bi"][None, :]),
        wo2=stack(lambda p: p["wo2"]),
        bo2=stack(lambda p: p["bo2"][None, :]),
        ln2_g=stack(lambda p: p["ln2_g"][None, :]),
        ln2_b=stack(lambda p: p["ln2_b"][None, :]),
    )
    # lane-dense classifier: pad N from num_labels to a multiple of 128
    lpad = max(lane_pad, ((num_labels + lane_pad - 1) // lane_pad) * lane_pad)
    packed["cls_w"] = jnp.zeros((hidden, lpad), jnp.float32).at[:, :num_labels].set(
        params["cls_w"])
    packed["cls_b"] = jnp.zeros((1, lpad), jnp.float32).at[:, :num_labels].set(
        params["cls_b"])
    return packed


def stack_crf(crf_list):
    return dict(
        start=jnp.stack([c["start"] for c in crf_list]),
        end=jnp.stack([c["end"] for c in crf_list]),
        trans=jnp.stack([c["trans"] for c in crf_list]),
    )


# ----------------------------------- main ------------------------------------ #

if __name__ == "__main__":
    B, S, H = 2, 8, 32
    HEADS, INTER = 4, 64
    NUM_LABELS = 5
    COUNT = 2
    NUM_ENCODER_LAYERS = 4   # length of the `layers` list passed to GRoIE

    key = jax.random.PRNGKey(0)
    k_layers, k_labels, k_params = jax.random.split(key, 3)

    layers = [jax.random.normal(jax.random.fold_in(k_layers, j), (B, S, H),
                                jnp.float32)
              for j in range(NUM_ENCODER_LAYERS)]
    attention_mask = jnp.ones((B, S), jnp.float32).at[1, 6:].set(0.0)
    labels = jax.random.randint(k_labels, (B, S), 0, NUM_LABELS)

    params = init_params(k_params, COUNT, H, HEADS, INTER, NUM_LABELS)
    packed = pack_params(params, hidden=H, num_heads=HEADS, num_labels=NUM_LABELS)
    crf_stacked = stack_crf(params["crf"])

    neg_total_loss, avg_logits = groie_forward(
        packed, crf_stacked, layers, attention_mask, labels,
        count=COUNT, num_labels=NUM_LABELS, num_heads=HEADS, seq_view=S)

    jax.block_until_ready((neg_total_loss, avg_logits))
    assert avg_logits.shape == (B, S, NUM_LABELS)
    assert neg_total_loss.shape == ()
    print("KERNEL_OK")
</pallas_src>

<mosaic_0001>
module attributes {stable_mosaic.version = 11 : i64} {
  func.func @_groie_layer_kernel(%arg0: i32, %arg1: memref<1x16x32xf32, #tpu.memory_space<vmem>>, %arg2: memref<2x8xf32, #tpu.memory_space<vmem>>, %arg3: memref<1x32x96xf32, #tpu.memory_space<vmem>>, %arg4: memref<1x1x96xf32, #tpu.memory_space<vmem>>, %arg5: memref<1x32x32xf32, #tpu.memory_space<vmem>>, %arg6: memref<1x1x32xf32, #tpu.memory_space<vmem>>, %arg7: memref<1x1x32xf32, #tpu.memory_space<vmem>>, %arg8: memref<1x1x32xf32, #tpu.memory_space<vmem>>, %arg9: memref<1x32x64xf32, #tpu.memory_space<vmem>>, %arg10: memref<1x1x64xf32, #tpu.memory_space<vmem>>, %arg11: memref<1x64x32xf32, #tpu.memory_space<vmem>>, %arg12: memref<1x1x32xf32, #tpu.memory_space<vmem>>, %arg13: memref<1x1x32xf32, #tpu.memory_space<vmem>>, %arg14: memref<1x1x32xf32, #tpu.memory_space<vmem>>, %arg15: memref<32x128xf32, #tpu.memory_space<vmem>>, %arg16: memref<1x128xf32, #tpu.memory_space<vmem>>, %arg17: memref<1x16x128xf32, #tpu.memory_space<vmem>>, %arg18: memref<16x32xf32, #tpu.memory_space<vmem>>) attributes {dimension_semantics = [#tpu.dimension_semantics<parallel>], iteration_bounds = array<i64: 2>, scalar_prefetch = 0 : i64, scratch_operands = 1 : i64, tpu.core_type = #tpu.core_type<tc>, window_params = [{transform_indices = @transform_0, window_bounds = array<i64: 1, 16, 32>}, {pipeline_mode = #tpu.pipeline_mode<synchronous>, transform_indices = @transform_1, window_bounds = array<i64: 2, 8>}, {transform_indices = @transform_2, window_bounds = array<i64: 1, 32, 96>}, {transform_indices = @transform_3, window_bounds = array<i64: 1, 1, 96>}, {transform_indices = @transform_4, window_bounds = array<i64: 1, 32, 32>}, {transform_indices = @transform_5, window_bounds = array<i64: 1, 1, 32>}, {transform_indices = @transform_6, window_bounds = array<i64: 1, 1, 32>}, {transform_indices = @transform_7, window_bounds = array<i64: 1, 1, 32>}, {transform_indices = @transform_8, window_bounds = array<i64: 1, 32, 64>}, {transform_indices = @transform_9, window_bounds = array<i64: 1, 1, 64>}, {transform_indices = @transform_10, window_bounds = array<i64: 1, 64, 32>}, {transform_indices = @transform_11, window_bounds = array<i64: 1, 1, 32>}, {transform_indices = @transform_12, window_bounds = array<i64: 1, 1, 32>}, {transform_indices = @transform_13, window_bounds = array<i64: 1, 1, 32>}, {pipeline_mode = #tpu.pipeline_mode<synchronous>, transform_indices = @transform_14, window_bounds = array<i64: 32, 128>}, {pipeline_mode = #tpu.pipeline_mode<synchronous>, transform_indices = @transform_15, window_bounds = array<i64: 1, 128>}, {transform_indices = @transform_16, window_bounds = array<i64: 1, 16, 128>}]} {
    %c0 = arith.constant 0 : index
    %c0_0 = arith.constant 0 : index
    %c0_1 = arith.constant 0 : index
    %0 = vector.load %arg1[%c0, %c0_0, %c0_1] : memref<1x16x32xf32, #tpu.memory_space<vmem>>, vector<1x16x32xf32>
    %1 = vector.shape_cast %0 : vector<1x16x32xf32> to vector<16x32xf32>
    %c0_2 = arith.constant 0 : index
    %c0_3 = arith.constant 0 : index
    %c0_4 = arith.constant 0 : index
    %2 = vector.load %arg3[%c0_2, %c0_3, %c0_4] : memref<1x32x96xf32, #tpu.memory_space<vmem>>, vector<1x32x96xf32>
    %3 = vector.shape_cast %2 : vector<1x32x96xf32> to vector<32x96xf32>
    %cst = arith.constant dense<0.000000e+00> : vector<16x96xf32>
    %4 = tpu.matmul %1, %3, %cst {dimension_numbers = #tpu.dot_dimension_numbers<[1], [0], [0], [1], [0, 0, 1, 1], [], []>} : vector<16x32xf32>, vector<32x96xf32>, vector<16x96xf32> -> vector<16x96xf32>
    %c0_5 = arith.constant 0 : index
    %c0_6 = arith.constant 0 : index
    %c0_7 = arith.constant 0 : index
    %5 = vector.load %arg4[%c0_5, %c0_6, %c0_7] : memref<1x1x96xf32, #tpu.memory_space<vmem>>, vector<1x1x96xf32>
    %6 = vector.shape_cast %5 : vector<1x1x96xf32> to vector<1x96xf32>
    %7 = vector.broadcast %6 : vector<1x96xf32> to vector<16x96xf32>
    %8 = arith.addf %4, %7 : vector<16x96xf32>
    %9 = vector.extract_strided_slice %8 {offsets = [0, 0], sizes = [16, 32], strides = [1, 1]} : vector<16x96xf32> to vector<16x32xf32>
    %10 = vector.extract_strided_slice %8 {offsets = [0, 32], sizes = [16, 32], strides = [1, 1]} : vector<16x96xf32> to vector<16x32xf32>
    %11 = vector.extract_strided_slice %8 {offsets = [0, 64], sizes = [16, 32], strides = [1, 1]} : vector<16x96xf32> to vector<16x32xf32>
    %c0_8 = arith.constant 0 : index
    %c0_9 = arith.constant 0 : index
    %12 = vector.load %arg2[%c0_8, %c0_9] : memref<2x8xf32, #tpu.memory_space<vmem>>, vector<1x8xf32>
    %13 = vector.extract_strided_slice %9 {offsets = [0, 0], sizes = [8, 8], strides = [1, 1]} : vector<16x32xf32> to vector<8x8xf32>
    %14 = vector.extract_strided_slice %10 {offsets = [0, 0], sizes = [8, 8], strides = [1, 1]} : vector<16x32xf32> to vector<8x8xf32>
    %15 = vector.extract_strided_slice %11 {offsets = [0, 0], sizes = [8, 8], strides = [1, 1]} : vector<16x32xf32> to vector<8x8xf32>
    %16 = tpu.transpose %14, [1, 0] : vector<8x8xf32> -> vector<8x8xf32>
    %cst_10 = arith.constant dense<0.000000e+00> : vector<8x8xf32>
    %17 = tpu.matmul %13, %16, %cst_10 {dimension_numbers = #tpu.dot_dimension_numbers<[1], [0], [0], [1], [0, 0, 1, 1], [], []>} : vector<8x8xf32>, vector<8x8xf32>, vector<8x8xf32> -> vector<8x8xf32>
    %18 = vector.broadcast %12 : vector<1x8xf32> to vector<8x8xf32>
    %19 = arith.addf %17, %18 : vector<8x8xf32>
    %cst_11 = arith.constant dense<0xFF800000> : vector<8xf32>
    %20 = vector.multi_reduction <maximumf>, %19, %cst_11 [1] : vector<8x8xf32> to vector<8xf32>
    %21 = vector.shape_cast %20 : vector<8xf32> to vector<8x1xf32>
    %22 = vector.broadcast %21 : vector<8x1xf32> to vector<8x8xf32>
    %23 = arith.subf %19, %22 : vector<8x8xf32>
    %24 = math.exp %23 : vector<8x8xf32>
    %cst_12 = arith.constant dense<0.000000e+00> : vector<8xf32>
    %25 = vector.multi_reduction <add>, %24, %cst_12 [1] : vector<8x8xf32> to vector<8xf32>
    %26 = vector.shape_cast %25 : vector<8xf32> to vector<8x1xf32>
    %27 = tpu.reciprocal %26 {approx = true} : vector<8x1xf32> -> vector<8x1xf32>
    %28 = vector.broadcast %27 : vector<8x1xf32> to vector<8x8xf32>
    %29 = arith.mulf %24, %28 : vector<8x8xf32>
    %cst_13 = arith.constant dense<0.000000e+00> : vector<8x8xf32>
    %30 = tpu.matmul %29, %15, %cst_13 {dimension_numbers = #tpu.dot_dimension_numbers<[1], [0], [0], [1], [0, 0, 1, 1], [], []>} : vector<8x8xf32>, vector<8x8xf32>, vector<8x8xf32> -> vector<8x8xf32>
    %c0_14 = arith.constant 0 : index
    %c0_15 = arith.constant 0 : index
    %31 = vector.load %arg18[%c0_14, %c0_15] : memref<16x32xf32, #tpu.memory_space<vmem>>, vector<8x8xf32>
    tpu.vector_store %arg18[%c0_14, %c0_15], %30 {strides = array<i32>} : memref<16x32xf32, #tpu.memory_space<vmem>>, vector<8x8xf32>,
    %32 = vector.extract_strided_slice %9 {offsets = [0, 8], sizes = [8, 8], strides = [1, 1]} : vector<16x32xf32> to vector<8x8xf32>
    %33 = vector.extract_strided_slice %10 {offsets = [0, 8], sizes = [8, 8], strides = [1, 1]} : vector<16x32xf32> to vector<8x8xf32>
    %34 = vector.extract_strided_slice %11 {offsets = [0, 8], sizes = [8, 8], strides = [1, 1]} : vector<16x32xf32> to vector<8x8xf32>
    %35 = tpu.transpose %33, [1, 0] : vector<8x8xf32> -> vector<8x8xf32>
    %cst_16 = arith.constant dense<0.000000e+00> : vector<8x8xf32>
    %36 = tpu.matmul %32, %35, %cst_16 {dimension_numbers = #tpu.dot_dimension_numbers<[1], [0], [0], [1], [0, 0, 1, 1], [], []>} : vector<8x8xf32>, vector<8x8xf32>, vector<8x8xf32> -> vector<8x8xf32>
    %37 = vector.broadcast %12 : vector<1x8xf32> to vector<8x8xf32>
    %38 = arith.addf %36, %37 : vector<8x8xf32>
    %cst_17 = arith.constant dense<0xFF800000> : vector<8xf32>
    %39 = vector.multi_reduction <maximumf>, %38, %cst_17 [1] : vector<8x8xf32> to vector<8xf32>
    %40 = vector.shape_cast %39 : vector<8xf32> to vector<8x1xf32>
    %41 = vector.broadcast %40 : vector<8x1xf32> to vector<8x8xf32>
    %42 = arith.subf %38, %41 : vector<8x8xf32>
    %43 = math.exp %42 : vector<8x8xf32>
    %cst_18 = arith.constant dense<0.000000e+00> : vector<8xf32>
    %44 = vector.multi_reduction <add>, %43, %cst_18 [1] : vector<8x8xf32> to vector<8xf32>
    %45 = vector.shape_cast %44 : vector<8xf32> to vector<8x1xf32>
    %46 = tpu.reciprocal %45 {approx = true} : vector<8x1xf32> -> vector<8x1xf32>
    %47 = vector.broadcast %46 : vector<8x1xf32> to vector<8x8xf32>
    %48 = arith.mulf %43, %47 : vector<8x8xf32>
    %cst_19 = arith.constant dense<0.000000e+00> : vector<8x8xf32>
    %49 = tpu.matmul %48, %34, %cst_19 {dimension_numbers = #tpu.dot_dimension_numbers<[1], [0], [0], [1], [0, 0, 1, 1], [], []>} : vector<8x8xf32>, vector<8x8xf32>, vector<8x8xf32> -> vector<8x8xf32>
    %c0_20 = arith.constant 0 : index
    %c8 = arith.constant 8 : index
    %50 = vector.load %arg18[%c0_20, %c8] : memref<16x32xf32, #tpu.memory_space<vmem>>, vector<8x8xf32>
    tpu.vector_store %arg18[%c0_20, %c8], %49 {strides = array<i32>} : memref<16x32xf32, #tpu.memory_space<vmem>>, vector<8x8xf32>,
    %51 = vector.extract_strided_slice %9 {offsets = [0, 16], sizes = [8, 8], strides = [1, 1]} : vector<16x32xf32> to vector<8x8xf32>
    %52 = vector.extract_strided_slice %10 {offsets = [0, 16], sizes = [8, 8], strides = [1, 1]} : vector<16x32xf32> to vector<8x8xf32>
    %53 = vector.extract_strided_slice %11 {offsets = [0, 16], sizes = [8, 8], strides = [1, 1]} : vector<16x32xf32> to vector<8x8xf32>
    %54 = tpu.transpose %52, [1, 0] : vector<8x8xf32> -> vector<8x8xf32>
    %cst_21 = arith.constant dense<0.000000e+00> : vector<8x8xf32>
    %55 = tpu.matmul %51, %54, %cst_21 {dimension_numbers = #tpu.dot_dimension_numbers<[1], [0], [0], [1], [0, 0, 1, 1], [], []>} : vector<8x8xf32>, vector<8x8xf32>, vector<8x8xf32> -> vector<8x8xf32>
    %56 = vector.broadcast %12 : vector<1x8xf32> to vector<8x8xf32>
    %57 = arith.addf %55, %56 : vector<8x8xf32>
    %cst_22 = arith.constant dense<0xFF800000> : vector<8xf32>
    %58 = vector.multi_reduction <maximumf>, %57, %cst_22 [1] : vector<8x8xf32> to vector<8xf32>
    %59 = vector.shape_cast %58 : vector<8xf32> to vector<8x1xf32>
    %60 = vector.broadcast %59 : vector<8x1xf32> to vector<8x8xf32>
    %61 = arith.subf %57, %60 : vector<8x8xf32>
    %62 = math.exp %61 : vector<8x8xf32>
    %cst_23 = arith.constant dense<0.000000e+00> : vector<8xf32>
    %63 = vector.multi_reduction <add>, %62, %cst_23 [1] : vector<8x8xf32> to vector<8xf32>
    %64 = vector.shape_cast %63 : vector<8xf32> to vector<8x1xf32>
    %65 = tpu.reciprocal %64 {approx = true} : vector<8x1xf32> -> vector<8x1xf32>
    %66 = vector.broadcast %65 : vector<8x1xf32> to vector<8x8xf32>
    %67 = arith.mulf %62, %66 : vector<8x8xf32>
    %cst_24 = arith.constant dense<0.000000e+00> : vector<8x8xf32>
    %68 = tpu.matmul %67, %53, %cst_24 {dimension_numbers = #tpu.dot_dimension_numbers<[1], [0], [0], [1], [0, 0, 1, 1], [], []>} : vector<8x8xf32>, vector<8x8xf32>, vector<8x8xf32> -> vector<8x8xf32>
    %c0_25 = arith.constant 0 : index
    %c16 = arith.constant 16 : index
    %69 = vector.load %arg18[%c0_25, %c16] : memref<16x32xf32, #tpu.memory_space<vmem>>, vector<8x8xf32>
    tpu.vector_store %arg18[%c0_25, %c16], %68 {strides = array<i32>} : memref<16x32xf32, #tpu.memory_space<vmem>>, vector<8x8xf32>,
    %70 = vector.extract_strided_slice %9 {offsets = [0, 24], sizes = [8, 8], strides = [1, 1]} : vector<16x32xf32> to vector<8x8xf32>
    %71 = vector.extract_strided_slice %10 {offsets = [0, 24], sizes = [8, 8], strides = [1, 1]} : vector<16x32xf32> to vector<8x8xf32>
    %72 = vector.extract_strided_slice %11 {offsets = [0, 24], sizes = [8, 8], strides = [1, 1]} : vector<16x32xf32> to vector<8x8xf32>
    %73 = tpu.transpose %71, [1, 0] : vector<8x8xf32> -> vector<8x8xf32>
    %cst_26 = arith.constant dense<0.000000e+00> : vector<8x8xf32>
    %74 = tpu.matmul %70, %73, %cst_26 {dimension_numbers = #tpu.dot_dimension_numbers<[1], [0], [0], [1], [0, 0, 1, 1], [], []>} : vector<8x8xf32>, vector<8x8xf32>, vector<8x8xf32> -> vector<8x8xf32>
    %75 = vector.broadcast %12 : vector<1x8xf32> to vector<8x8xf32>
    %76 = arith.addf %74, %75 : vector<8x8xf32>
    %cst_27 = arith.constant dense<0xFF800000> : vector<8xf32>
    %77 = vector.multi_reduction <maximumf>, %76, %cst_27 [1] : vector<8x8xf32> to vector<8xf32>
    %78 = vector.shape_cast %77 : vector<8xf32> to vector<8x1xf32>
    %79 = vector.broadcast %78 : vector<8x1xf32> to vector<8x8xf32>
    %80 = arith.subf %76, %79 : vector<8x8xf32>
    %81 = math.exp %80 : vector<8x8xf32>
    %cst_28 = arith.constant dense<0.000000e+00> : vector<8xf32>
    %82 = vector.multi_reduction <add>, %81, %cst_28 [1] : vector<8x8xf32> to vector<8xf32>
    %83 = vector.shape_cast %82 : vector<8xf32> to vector<8x1xf32>
    %84 = tpu.reciprocal %83 {approx = true} : vector<8x1xf32> -> vector<8x1xf32>
    %85 = vector.broadcast %84 : vector<8x1xf32> to vector<8x8xf32>
    %86 = arith.mulf %81, %85 : vector<8x8xf32>
    %cst_29 = arith.constant dense<0.000000e+00> : vector<8x8xf32>
    %87 = tpu.matmul %86, %72, %cst_29 {dimension_numbers = #tpu.dot_dimension_numbers<[1], [0], [0], [1], [0, 0, 1, 1], [], []>} : vector<8x8xf32>, vector<8x8xf32>, vector<8x8xf32> -> vector<8x8xf32>
    %c0_30 = arith.constant 0 : index
    %c24 = arith.constant 24 : index
    %88 = vector.load %arg18[%c0_30, %c24] : memref<16x32xf32, #tpu.memory_space<vmem>>, vector<8x8xf32>
    tpu.vector_store %arg18[%c0_30, %c24], %87 {strides = array<i32>} : memref<16x32xf32, #tpu.memory_space<vmem>>, vector<8x8xf32>,
    %c1 = arith.constant 1 : index
    %c0_31 = arith.constant 0 : index
    %89 = vector.load %arg2[%c1, %c0_31] : memref<2x8xf32, #tpu.memory_space<vmem>>, vector<1x8xf32>
    %90 = vector.extract_strided_slice %9 {offsets = [8, 0], sizes = [8, 8], strides = [1, 1]} : vector<16x32xf32> to vector<8x8xf32>
    %91 = vector.extract_strided_slice %10 {offsets = [8, 0], sizes = [8, 8], strides = [1, 1]} : vector<16x32xf32> to vector<8x8xf32>
    %92 = vector.extract_strided_slice %11 {offsets = [8, 0], sizes = [8, 8], strides = [1, 1]} : vector<16x32xf32> to vector<8x8xf32>
    %93 = tpu.transpose %91, [1, 0] : vector<8x8xf32> -> vector<8x8xf32>
    %cst_32 = arith.constant dense<0.000000e+00> : vector<8x8xf32>
    %94 = tpu.matmul %90, %93, %cst_32 {dimension_numbers = #tpu.dot_dimension_numbers<[1], [0], [0], [1], [0, 0, 1, 1], [], []>} : vector<8x8xf32>, vector<8x8xf32>, vector<8x8xf32> -> vector<8x8xf32>
    %95 = vector.broadcast %89 : vector<1x8xf32> to vector<8x8xf32>
    %96 = arith.addf %94, %95 : vector<8x8xf32>
    %cst_33 = arith.constant dense<0xFF800000> : vector<8xf32>
    %97 = vector.multi_reduction <maximumf>, %96, %cst_33 [1] : vector<8x8xf32> to vector<8xf32>
    %98 = vector.shape_cast %97 : vector<8xf32> to vector<8x1xf32>
    %99 = vector.broadcast %98 : vector<8x1xf32> to vector<8x8xf32>
    %100 = arith.subf %96, %99 : vector<8x8xf32>
    %101 = math.exp %100 : vector<8x8xf32>
    %cst_34 = arith.constant dense<0.000000e+00> : vector<8xf32>
    %102 = vector.multi_reduction <add>, %101, %cst_34 [1] : vector<8x8xf32> to vector<8xf32>
    %103 = vector.shape_cast %102 : vector<8xf32> to vector<8x1xf32>
    %104 = tpu.reciprocal %103 {approx = true} : vector<8x1xf32> -> vector<8x1xf32>
    %105 = vector.broadcast %104 : vector<8x1xf32> to vector<8x8xf32>
    %106 = arith.mulf %101, %105 : vector<8x8xf32>
    %cst_35 = arith.constant dense<0.000000e+00> : vector<8x8xf32>
    %107 = tpu.matmul %106, %92, %cst_35 {dimension_numbers = #tpu.dot_dimension_numbers<[1], [0], [0], [1], [0, 0, 1, 1], [], []>} : vector<8x8xf32>, vector<8x8xf32>, vector<8x8xf32> -> vector<8x8xf32>
    %c8_36 = arith.constant 8 : index
    %c0_37 = arith.constant 0 : index
    %108 = vector.load %arg18[%c8_36, %c0_37] : memref<16x32xf32, #tpu.memory_space<vmem>>, vector<8x8xf32>
    tpu.vector_store %arg18[%c8_36, %c0_37], %107 {strides = array<i32>} : memref<16x32xf32, #tpu.memory_space<vmem>>, vector<8x8xf32>,
    %109 = vector.extract_strided_slice %9 {offsets = [8, 8], sizes = [8, 8], strides = [1, 1]} : vector<16x32xf32> to vector<8x8xf32>
    %110 = vector.extract_strided_slice %10 {offsets = [8, 8], sizes = [8, 8], strides = [1, 1]} : vector<16x32xf32> to vector<8x8xf32>
    %111 = vector.extract_strided_slice %11 {offsets = [8, 8], sizes = [8, 8], strides = [1, 1]} : vector<16x32xf32> to vector<8x8xf32>
    %112 = tpu.transpose %110, [1, 0] : vector<8x8xf32> -> vector<8x8xf32>
    %cst_38 = arith.constant dense<0.000000e+00> : vector<8x8xf32>
    %113 = tpu.matmul %109, %112, %cst_38 {dimension_numbers = #tpu.dot_dimension_numbers<[1], [0], [0], [1], [0, 0, 1, 1], [], []>} : vector<8x8xf32>, vector<8x8xf32>, vector<8x8xf32> -> vector<8x8xf32>
    %114 = vector.broadcast %89 : vector<1x8xf32> to vector<8x8xf32>
    %115 = arith.addf %113, %114 : vector<8x8xf32>
    %cst_39 = arith.constant dense<0xFF800000> : vector<8xf32>
    %116 = vector.multi_reduction <maximumf>, %115, %cst_39 [1] : vector<8x8xf32> to vector<8xf32>
    %117 = vector.shape_cast %116 : vector<8xf32> to vector<8x1xf32>
    %118 = vector.broadcast %117 : vector<8x1xf32> to vector<8x8xf32>
    %119 = arith.subf %115, %118 : vector<8x8xf32>
    %120 = math.exp %119 : vector<8x8xf32>
    %cst_40 = arith.constant dense<0.000000e+00> : vector<8xf32>
    %121 = vector.multi_reduction <add>, %120, %cst_40 [1] : vector<8x8xf32> to vector<8xf32>
    %122 = vector.shape_cast %121 : vector<8xf32> to vector<8x1xf32>
    %123 = tpu.reciprocal %122 {approx = true} : vector<8x1xf32> -> vector<8x1xf32>
    %124 = vector.broadcast %123 : vector<8x1xf32> to vector<8x8xf32>
    %125 = arith.mulf %120, %124 : vector<8x8xf32>
    %cst_41 = arith.constant dense<0.000000e+00> : vector<8x8xf32>
    %126 = tpu.matmul %125, %111, %cst_41 {dimension_numbers = #tpu.dot_dimension_numbers<[1], [0], [0], [1], [0, 0, 1, 1], [], []>} : vector<8x8xf32>, vector<8x8xf32>, vector<8x8xf32> -> vector<8x8xf32>
    %c8_42 = arith.constant 8 : index
    %c8_43 = arith.constant 8 : index
    %127 = vector.load %arg18[%c8_42, %c8_43] : memref<16x32xf32, #tpu.memory_space<vmem>>, vector<8x8xf32>
    tpu.vector_store %arg18[%c8_42, %c8_43], %126 {strides = array<i32>} : memref<16x32xf32, #tpu.memory_space<vmem>>, vector<8x8xf32>,
    %128 = vector.extract_strided_slice %9 {offsets = [8, 16], sizes = [8, 8], strides = [1, 1]} : vector<16x32xf32> to vector<8x8xf32>
    %129 = vector.extract_strided_slice %10 {offsets = [8, 16], sizes = [8, 8], strides = [1, 1]} : vector<16x32xf32> to vector<8x8xf32>
    %130 = vector.extract_strided_slice %11 {offsets = [8, 16], sizes = [8, 8], strides = [1, 1]} : vector<16x32xf32> to vector<8x8xf32>
    %131 = tpu.transpose %129, [1, 0] : vector<8x8xf32> -> vector<8x8xf32>
    %cst_44 = arith.constant dense<0.000000e+00> : vector<8x8xf32>
    %132 = tpu.matmul %128, %131, %cst_44 {dimension_numbers = #tpu.dot_dimension_numbers<[1], [0], [0], [1], [0, 0, 1, 1], [], []>} : vector<8x8xf32>, vector<8x8xf32>, vector<8x8xf32> -> vector<8x8xf32>
    %133 = vector.broadcast %89 : vector<1x8xf32> to vector<8x8xf32>
    %134 = arith.addf %132, %133 : vector<8x8xf32>
    %cst_45 = arith.constant dense<0xFF800000> : vector<8xf32>
    %135 = vector.multi_reduction <maximumf>, %134, %cst_45 [1] : vector<8x8xf32> to vector<8xf32>
    %136 = vector.shape_cast %135 : vector<8xf32> to vector<8x1xf32>
    %137 = vector.broadcast %136 : vector<8x1xf32> to vector<8x8xf32>
    %138 = arith.subf %134, %137 : vector<8x8xf32>
    %139 = math.exp %138 : vector<8x8xf32>
    %cst_46 = arith.constant dense<0.000000e+00> : vector<8xf32>
    %140 = vector.multi_reduction <add>, %139, %cst_46 [1] : vector<8x8xf32> to vector<8xf32>
    %141 = vector.shape_cast %140 : vector<8xf32> to vector<8x1xf32>
    %142 = tpu.reciprocal %141 {approx = true} : vector<8x1xf32> -> vector<8x1xf32>
    %143 = vector.broadcast %142 : vector<8x1xf32> to vector<8x8xf32>
    %144 = arith.mulf %139, %143 : vector<8x8xf32>
    %cst_47 = arith.constant dense<0.000000e+00> : vector<8x8xf32>
    %145 = tpu.matmul %144, %130, %cst_47 {dimension_numbers = #tpu.dot_dimension_numbers<[1], [0], [0], [1], [0, 0, 1, 1], [], []>} : vector<8x8xf32>, vector<8x8xf32>, vector<8x8xf32> -> vector<8x8xf32>
    %c8_48 = arith.constant 8 : index
    %c16_49 = arith.constant 16 : index
    %146 = vector.load %arg18[%c8_48, %c16_49] : memref<16x32xf32, #tpu.memory_space<vmem>>, vector<8x8xf32>
    tpu.vector_store %arg18[%c8_48, %c16_49], %145 {strides = array<i32>} : memref<16x32xf32, #tpu.memory_space<vmem>>, vector<8x8xf32>,
    %147 = vector.extract_strided_slice %9 {offsets = [8, 24], sizes = [8, 8], strides = [1, 1]} : vector<16x32xf32> to vector<8x8xf32>
    %148 = vector.extract_strided_slice %10 {offsets = [8, 24], sizes = [8, 8], strides = [1, 1]} : vector<16x32xf32> to vector<8x8xf32>
    %149 = vector.extract_strided_slice %11 {offsets = [8, 24], sizes = [8, 8], strides = [1, 1]} : vector<16x32xf32> to vector<8x8xf32>
    %150 = tpu.transpose %148, [1, 0] : vector<8x8xf32> -> vector<8x8xf32>
    %cst_50 = arith.constant dense<0.000000e+00> : vector<8x8xf32>
    %151 = tpu.matmul %147, %150, %cst_50 {dimension_numbers = #tpu.dot_dimension_numbers<[1], [0], [0], [1], [0, 0, 1, 1], [], []>} : vector<8x8xf32>, vector<8x8xf32>, vector<8x8xf32> -> vector<8x8xf32>
    %152 = vector.broadcast %89 : vector<1x8xf32> to vector<8x8xf32>
    %153 = arith.addf %151, %152 : vector<8x8xf32>
    %cst_51 = arith.constant dense<0xFF800000> : vector<8xf32>
    %154 = vector.multi_reduction <maximumf>, %153, %cst_51 [1] : vector<8x8xf32> to vector<8xf32>
    %155 = vector.shape_cast %154 : vector<8xf32> to vector<8x1xf32>
    %156 = vector.broadcast %155 : vector<8x1xf32> to vector<8x8xf32>
    %157 = arith.subf %153, %156 : vector<8x8xf32>
    %158 = math.exp %157 : vector<8x8xf32>
    %cst_52 = arith.constant dense<0.000000e+00> : vector<8xf32>
    %159 = vector.multi_reduction <add>, %158, %cst_52 [1] : vector<8x8xf32> to vector<8xf32>
    %160 = vector.shape_cast %159 : vector<8xf32> to vector<8x1xf32>
    %161 = tpu.reciprocal %160 {approx = true} : vector<8x1xf32> -> vector<8x1xf32>
    %162 = vector.broadcast %161 : vector<8x1xf32> to vector<8x8xf32>
    %163 = arith.mulf %158, %162 : vector<8x8xf32>
    %cst_53 = arith.constant dense<0.000000e+00> : vector<8x8xf32>
    %164 = tpu.matmul %163, %149, %cst_53 {dimension_numbers = #tpu.dot_dimension_numbers<[1], [0], [0], [1], [0, 0, 1, 1], [], []>} : vector<8x8xf32>, vector<8x8xf32>, vector<8x8xf32> -> vector<8x8xf32>
    %c8_54 = arith.constant 8 : index
    %c24_55 = arith.constant 24 : index
    %165 = vector.load %arg18[%c8_54, %c24_55] : memref<16x32xf32, #tpu.memory_space<vmem>>, vector<8x8xf32>
    tpu.vector_store %arg18[%c8_54, %c24_55], %164 {strides = array<i32>} : memref<16x32xf32, #tpu.memory_space<vmem>>, vector<8x8xf32>,
    %c0_56 = arith.constant 0 : index
    %c0_57 = arith.constant 0 : index
    %166 = vector.load %arg18[%c0_56, %c0_57] : memref<16x32xf32, #tpu.memory_space<vmem>>, vector<16x32xf32>
    %c0_58 = arith.constant 0 : index
    %c0_59 = arith.constant 0 : index
    %c0_60 = arith.constant 0 : index
    %167 = vector.load %arg5[%c0_58, %c0_59, %c0_60] : memref<1x32x32xf32, #tpu.memory_space<vmem>>, vector<1x32x32xf32>
    %168 = vector.shape_cast %167 : vector<1x32x32xf32> to vector<32x32xf32>
    %cst_61 = arith.constant dense<0.000000e+00> : vector<16x32xf32>
    %169 = tpu.matmul %166, %168, %cst_61 {dimension_numbers = #tpu.dot_dimension_numbers<[1], [0], [0], [1], [0, 0, 1, 1], [], []>} : vector<16x32xf32>, vector<32x32xf32>, vector<16x32xf32> -> vector<16x32xf32>
    %c0_62 = arith.constant 0 : index
    %c0_63 = arith.constant 0 : index
    %c0_64 = arith.constant 0 : index
    %170 = vector.load %arg6[%c0_62, %c0_63, %c0_64] : memref<1x1x32xf32, #tpu.memory_space<vmem>>, vector<1x1x32xf32>
    %171 = vector.shape_cast %170 : vector<1x1x32xf32> to vector<1x32xf32>
    %172 = vector.broadcast %171 : vector<1x32xf32> to vector<16x32xf32>
    %173 = arith.addf %169, %172 : vector<16x32xf32>
    %174 = arith.addf %173, %1 : vector<16x32xf32>
    %c0_65 = arith.constant 0 : index
    %c0_66 = arith.constant 0 : index
    %c0_67 = arith.constant 0 : index
    %175 = vector.load %arg7[%c0_65, %c0_66, %c0_67] : memref<1x1x32xf32, #tpu.memory_space<vmem>>, vector<1x1x32xf32>
    %176 = vector.shape_cast %175 : vector<1x1x32xf32> to vector<1x32xf32>
    %c0_68 = arith.constant 0 : index
    %c0_69 = arith.constant 0 : index
    %c0_70 = arith.constant 0 : index
    %177 = vector.load %arg8[%c0_68, %c0_69, %c0_70] : memref<1x1x32xf32, #tpu.memory_space<vmem>>, vector<1x1x32xf32>
    %178 = vector.shape_cast %177 : vector<1x1x32xf32> to vector<1x32xf32>
    %cst_71 = arith.constant dense<0.000000e+00> : vector<16xf32>
    %179 = vector.multi_reduction <add>, %174, %cst_71 [1] : vector<16x32xf32> to vector<16xf32>
    %180 = vector.shape_cast %179 : vector<16xf32> to vector<16x1xf32>
    %cst_72 = arith.constant 3.200000e+01 : f32
    %181 = vector.broadcast %cst_72 : f32 to vector<16x1xf32>
    %182 = arith.divf %180, %181 : vector<16x1xf32>
    %183 = vector.broadcast %182 : vector<16x1xf32> to vector<16x32xf32>
    %184 = arith.subf %174, %183 : vector<16x32xf32>
    %185 = arith.mulf %184, %184 : vector<16x32xf32>
    %cst_73 = arith.constant dense<0.000000e+00> : vector<16xf32>
    %186 = vector.multi_reduction <add>, %185, %cst_73 [1] : vector<16x32xf32> to vector<16xf32>
    %187 = vector.shape_cast %186 : vector<16xf32> to vector<16x1xf32>
    %cst_74 = arith.constant 3.200000e+01 : f32
    %188 = vector.broadcast %cst_74 : f32 to vector<16x1xf32>
    %189 = arith.divf %187, %188 : vector<16x1xf32>
    %190 = vector.broadcast %182 : vector<16x1xf32> to vector<16x32xf32>
    %191 = arith.subf %174, %190 : vector<16x32xf32>
    %cst_75 = arith.constant 9.99999996E-13 : f32
    %192 = vector.broadcast %cst_75 : f32 to vector<16x1xf32>
    %193 = arith.addf %189, %192 : vector<16x1xf32>
    %194 = math.rsqrt %193 : vector<16x1xf32>
    %195 = vector.broadcast %194 : vector<16x1xf32> to vector<16x32xf32>
    %196 = arith.mulf %191, %195 : vector<16x32xf32>
    %197 = vector.broadcast %176 : vector<1x32xf32> to vector<16x32xf32>
    %198 = arith.mulf %196, %197 : vector<16x32xf32>
    %199 = vector.broadcast %178 : vector<1x32xf32> to vector<16x32xf32>
    %200 = arith.addf %198, %199 : vector<16x32xf32>
    %c0_76 = arith.constant 0 : index
    %c0_77 = arith.constant 0 : index
    %c0_78 = arith.constant 0 : index
    %201 = vector.load %arg9[%c0_76, %c0_77, %c0_78] : memref<1x32x64xf32, #tpu.memory_space<vmem>>, vector<1x32x64xf32>
    %202 = vector.shape_cast %201 : vector<1x32x64xf32> to vector<32x64xf32>
    %cst_79 = arith.constant dense<0.000000e+00> : vector<16x64xf32>
    %203 = tpu.matmul %200, %202, %cst_79 {dimension_numbers = #tpu.dot_dimension_numbers<[1], [0], [0], [1], [0, 0, 1, 1], [], []>} : vector<16x32xf32>, vector<32x64xf32>, vector<16x64xf32> -> vector<16x64xf32>
    %c0_80 = arith.constant 0 : index
    %c0_81 = arith.constant 0 : index
    %c0_82 = arith.constant 0 : index
    %204 = vector.load %arg10[%c0_80, %c0_81, %c0_82] : memref<1x1x64xf32, #tpu.memory_space<vmem>>, vector<1x1x64xf32>
    %205 = vector.shape_cast %204 : vector<1x1x64xf32> to vector<1x64xf32>
    %206 = vector.broadcast %205 : vector<1x64xf32> to vector<16x64xf32>
    %207 = arith.addf %203, %206 : vector<16x64xf32>
    %208 = arith.mulf %207, %207 : vector<16x64xf32>
    %209 = arith.mulf %207, %208 : vector<16x64xf32>
    %cst_83 = arith.constant 4.471500e-02 : f32
    %210 = vector.broadcast %cst_83 : f32 to vector<16x64xf32>
    %211 = arith.mulf %210, %209 : vector<16x64xf32>
    %212 = arith.addf %207, %211 : vector<16x64xf32>
    %cst_84 = arith.constant 0.797884583 : f32
    %213 = vector.broadcast %cst_84 : f32 to vector<16x64xf32>
    %214 = arith.mulf %213, %212 : vector<16x64xf32>
    %215 = math.tanh %214 : vector<16x64xf32>
    %cst_85 = arith.constant 1.000000e+00 : f32
    %216 = vector.broadcast %cst_85 : f32 to vector<16x64xf32>
    %217 = arith.addf %216, %215 : vector<16x64xf32>
    %cst_86 = arith.constant 5.000000e-01 : f32
    %218 = vector.broadcast %cst_86 : f32 to vector<16x64xf32>
    %219 = arith.mulf %218, %217 : vector<16x64xf32>
    %220 = arith.mulf %207, %219 : vector<16x64xf32>
    %c0_87 = arith.constant 0 : index
    %c0_88 = arith.constant 0 : index
    %c0_89 = arith.constant 0 : index
    %221 = vector.load %arg11[%c0_87, %c0_88, %c0_89] : memref<1x64x32xf32, #tpu.memory_space<vmem>>, vector<1x64x32xf32>
    %222 = vector.shape_cast %221 : vector<1x64x32xf32> to vector<64x32xf32>
    %cst_90 = arith.constant dense<0.000000e+00> : vector<16x32xf32>
    %223 = tpu.matmul %220, %222, %cst_90 {dimension_numbers = #tpu.dot_dimension_numbers<[1], [0], [0], [1], [0, 0, 1, 1], [], []>} : vector<16x64xf32>, vector<64x32xf32>, vector<16x32xf32> -> vector<16x32xf32>
    %c0_91 = arith.constant 0 : index
    %c0_92 = arith.constant 0 : index
    %c0_93 = arith.constant 0 : index
    %224 = vector.load %arg12[%c0_91, %c0_92, %c0_93] : memref<1x1x32xf32, #tpu.memory_space<vmem>>, vector<1x1x32xf32>
    %225 = vector.shape_cast %224 : vector<1x1x32xf32> to vector<1x32xf32>
    %226 = vector.broadcast %225 : vector<1x32xf32> to vector<16x32xf32>
    %227 = arith.addf %223, %226 : vector<16x32xf32>
    %228 = arith.addf %227, %200 : vector<16x32xf32>
    %c0_94 = arith.constant 0 : index
    %c0_95 = arith.constant 0 : index
    %c0_96 = arith.constant 0 : index
    %229 = vector.load %arg13[%c0_94, %c0_95, %c0_96] : memref<1x1x32xf32, #tpu.memory_space<vmem>>, vector<1x1x32xf32>
    %230 = vector.shape_cast %229 : vector<1x1x32xf32> to vector<1x32xf32>
    %c0_97 = arith.constant 0 : index
    %c0_98 = arith.constant 0 : index
    %c0_99 = arith.constant 0 : index
    %231 = vector.load %arg14[%c0_97, %c0_98, %c0_99] : memref<1x1x32xf32, #tpu.memory_space<vmem>>, vector<1x1x32xf32>
    %232 = vector.shape_cast %231 : vector<1x1x32xf32> to vector<1x32xf32>
    %cst_100 = arith.constant dense<0.000000e+00> : vector<16xf32>
    %233 = vector.multi_reduction <add>, %228, %cst_100 [1] : vector<16x32xf32> to vector<16xf32>
    %234 = vector.shape_cast %233 : vector<16xf32> to vector<16x1xf32>
    %cst_101 = arith.constant 3.200000e+01 : f32
    %235 = vector.broadcast %cst_101 : f32 to vector<16x1xf32>
    %236 = arith.divf %234, %235 : vector<16x1xf32>
    %237 = vector.broadcast %236 : vector<16x1xf32> to vector<16x32xf32>
    %238 = arith.subf %228, %237 : vector<16x32xf32>
    %239 = arith.mulf %238, %238 : vector<16x32xf32>
    %cst_102 = arith.constant dense<0.000000e+00> : vector<16xf32>
    %240 = vector.multi_reduction <add>, %239, %cst_102 [1] : vector<16x32xf32> to vector<16xf32>
    %241 = vector.shape_cast %240 : vector<16xf32> to vector<16x1xf32>
    %cst_103 = arith.constant 3.200000e+01 : f32
    %242 = vector.broadcast %cst_103 : f32 to vector<16x1xf32>
    %243 = arith.divf %241, %242 : vector<16x1xf32>
    %244 = vector.broadcast %236 : vector<16x1xf32> to vector<16x32xf32>
    %245 = arith.subf %228, %244 : vector<16x32xf32>
    %cst_104 = arith.constant 9.99999996E-13 : f32
    %246 = vector.broadcast %cst_104 : f32 to vector<16x1xf32>
    %247 = arith.addf %243, %246 : vector<16x1xf32>
    %248 = math.rsqrt %247 : vector<16x1xf32>
    %249 = vector.broadcast %248 : vector<16x1xf32> to vector<16x32xf32>
    %250 = arith.mulf %245, %249 : vector<16x32xf32>
    %251 = vector.broadcast %230 : vector<1x32xf32> to vector<16x32xf32>
    %252 = arith.mulf %250, %251 : vector<16x32xf32>
    %253 = vector.broadcast %232 : vector<1x32xf32> to vector<16x32xf32>
    %254 = arith.addf %252, %253 : vector<16x32xf32>
    %c0_105 = arith.constant 0 : index
    %c0_106 = arith.constant 0 : index
    %255 = vector.load %arg15[%c0_105, %c0_106] : memref<32x128xf32, #tpu.memory_space<vmem>>, vector<32x128xf32>
    %cst_107 = arith.constant dense<0.000000e+00> : vector<16x128xf32>
    %256 = tpu.matmul %254, %255, %cst_107 {dimension_numbers = #tpu.dot_dimension_numbers<[1], [0], [0], [1], [0, 0, 1, 1], [], []>} : vector<16x32xf32>, vector<32x128xf32>, vector<16x128xf32> -> vector<16x128xf32>
    %c0_108 = arith.constant 0 : index
    %c0_109 = arith.constant 0 : index
    %257 = vector.load %arg16[%c0_108, %c0_109] : memref<1x128xf32, #tpu.memory_space<vmem>>, vector<1x128xf32>
    %258 = vector.broadcast %257 : vector<1x128xf32> to vector<16x128xf32>
    %259 = arith.addf %256, %258 : vector<16x128xf32>
    %c0_110 = arith.constant 0 : index
    %c0_111 = arith.constant 0 : index
    %c0_112 = arith.constant 0 : index
    %260 = vector.load %arg17[%c0_110, %c0_111, %c0_112] : memref<1x16x128xf32, #tpu.memory_space<vmem>>, vector<1x16x128xf32>
    %261 = vector.shape_cast %260 : vector<1x16x128xf32> to vector<16x128xf32>
    %262 = vector.shape_cast %259 : vector<16x128xf32> to vector<1x16x128xf32>
    tpu.vector_store %arg17[%c0_110, %c0_111, %c0_112], %262 {strides = array<i32>} : memref<1x16x128xf32, #tpu.memory_space<vmem>>, vector<1x16x128xf32>,
    return
  }
  func.func @transform_0(%arg0: i32) -> (i32, i32, i32) {
    %c0_i32 = arith.constant 0 : i32
    %c0_i32_0 = arith.constant 0 : i32
    %c0_i32_1 = arith.constant 0 : i32
    return %arg0, %c0_i32, %c0_i32_0 : i32, i32, i32
  }
  func.func @transform_1(%arg0: i32) -> (i32, i32) {
    %c0_i32 = arith.constant 0 : i32
    %c0_i32_0 = arith.constant 0 : i32
    %c0_i32_1 = arith.constant 0 : i32
    return %c0_i32, %c0_i32_0 : i32, i32
  }
  func.func @transform_2(%arg0: i32) -> (i32, i32, i32) {
    %c0_i32 = arith.constant 0 : i32
    %c0_i32_0 = arith.constant 0 : i32
    %c0_i32_1 = arith.constant 0 : i32
    return %arg0, %c0_i32, %c0_i32_0 : i32, i32, i32
  }
  func.func @transform_3(%arg0: i32) -> (i32, i32, i32) {
    %c0_i32 = arith.constant 0 : i32
    %c0_i32_0 = arith.constant 0 : i32
    %c0_i32_1 = arith.constant 0 : i32
    return %arg0, %c0_i32, %c0_i32_0 : i32, i32, i32
  }
  func.func @transform_4(%arg0: i32) -> (i32, i32, i32) {
    %c0_i32 = arith.constant 0 : i32
    %c0_i32_0 = arith.constant 0 : i32
    %c0_i32_1 = arith.constant 0 : i32
    return %arg0, %c0_i32, %c0_i32_0 : i32, i32, i32
  }
  func.func @transform_5(%arg0: i32) -> (i32, i32, i32) {
    %c0_i32 = arith.constant 0 : i32
    %c0_i32_0 = arith.constant 0 : i32
    %c0_i32_1 = arith.constant 0 : i32
    return %arg0, %c0_i32, %c0_i32_0 : i32, i32, i32
  }
  func.func @transform_6(%arg0: i32) -> (i32, i32, i32) {
    %c0_i32 = arith.constant 0 : i32
    %c0_i32_0 = arith.constant 0 : i32
    %c0_i32_1 = arith.constant 0 : i32
    return %arg0, %c0_i32, %c0_i32_0 : i32, i32, i32
  }
  func.func @transform_7(%arg0: i32) -> (i32, i32, i32) {
    %c0_i32 = arith.constant 0 : i32
    %c0_i32_0 = arith.constant 0 : i32
    %c0_i32_1 = arith.constant 0 : i32
    return %arg0, %c0_i32, %c0_i32_0 : i32, i32, i32
  }
  func.func @transform_8(%arg0: i32) -> (i32, i32, i32) {
    %c0_i32 = arith.constant 0 : i32
    %c0_i32_0 = arith.constant 0 : i32
    %c0_i32_1 = arith.constant 0 : i32
    return %arg0, %c0_i32, %c0_i32_0 : i32, i32, i32
  }
  func.func @transform_9(%arg0: i32) -> (i32, i32, i32) {
    %c0_i32 = arith.constant 0 : i32
    %c0_i32_0 = arith.constant 0 : i32
    %c0_i32_1 = arith.constant 0 : i32
    return %arg0, %c0_i32, %c0_i32_0 : i32, i32, i32
  }
  func.func @transform_10(%arg0: i32) -> (i32, i32, i32) {
    %c0_i32 = arith.constant 0 : i32
    %c0_i32_0 = arith.constant 0 : i32
    %c0_i32_1 = arith.constant 0 : i32
    return %arg0, %c0_i32, %c0_i32_0 : i32, i32, i32
  }
  func.func @transform_11(%arg0: i32) -> (i32, i32, i32) {
    %c0_i32 = arith.constant 0 : i32
    %c0_i32_0 = arith.constant 0 : i32
    %c0_i32_1 = arith.constant 0 : i32
    return %arg0, %c0_i32, %c0_i32_0 : i32, i32, i32
  }
  func.func @transform_12(%arg0: i32) -> (i32, i32, i32) {
    %c0_i32 = arith.constant 0 : i32
    %c0_i32_0 = arith.constant 0 : i32
    %c0_i32_1 = arith.constant 0 : i32
    return %arg0, %c0_i32, %c0_i32_0 : i32, i32, i32
  }
  func.func @transform_13(%arg0: i32) -> (i32, i32, i32) {
    %c0_i32 = arith.constant 0 : i32
    %c0_i32_0 = arith.constant 0 : i32
    %c0_i32_1 = arith.constant 0 : i32
    return %arg0, %c0_i32, %c0_i32_0 : i32, i32, i32
  }
  func.func @transform_14(%arg0: i32) -> (i32, i32) {
    %c0_i32 = arith.constant 0 : i32
    %c0_i32_0 = arith.constant 0 : i32
    %c0_i32_1 = arith.constant 0 : i32
    return %c0_i32, %c0_i32_0 : i32, i32
  }
  func.func @transform_15(%arg0: i32) -> (i32, i32) {
    %c0_i32 = arith.constant 0 : i32
    %c0_i32_0 = arith.constant 0 : i32
    %c0_i32_1 = arith.constant 0 : i32
    return %c0_i32, %c0_i32_0 : i32, i32
  }
  func.func @transform_16(%arg0: i32) -> (i32, i32, i32) {
    %c0_i32 = arith.constant 0 : i32
    %c0_i32_0 = arith.constant 0 : i32
    %c0_i32_1 = arith.constant 0 : i32
    return %arg0, %c0_i32, %c0_i32_0 : i32, i32, i32
  }
}

</mosaic_0001>

<bundles_post_ra>
// kernel: groie_forward.1
= control target key start
LH: loop header
LB: loop body
LE: loop exit
PB: predicated region body
PF: predicated region fallthrough
CT: control target
= control target key end

     0   :  { %s3340_s21 = smov 0   ;;  %s3630_s0 = inlined_call_operand.vmem [shape: f32[2,16,32], index: 0, kind: input, shape index: {}]   ;;  %s3631_s1 = inlined_call_operand.vmem [shape: f32[2,8], index: 1, kind: input, shape index: {}]   ;;  %s3632_s2 = inlined_call_operand.vmem [shape: f32[2,32,96], index: 2, kind: input, shape index: {}]   ;;  %s3633_s3 = inlined_call_operand.vmem [shape: f32[2,1,96], index: 3, kind: input, shape index: {}]   ;;  %s3634_s4 = inlined_call_operand.vmem [shape: f32[2,32,32], index: 4, kind: input, shape index: {}]   ;;  %s3635_s5 = inlined_call_operand.vmem [shape: f32[2,1,32], index: 5, kind: input, shape index: {}]   ;;  %s3636_s6 = inlined_call_operand.vmem [shape: f32[2,1,32], index: 6, kind: input, shape index: {}]   ;;  %s3637_s7 = inlined_call_operand.vmem [shape: f32[2,1,32], index: 7, kind: input, shape index: {}]   ;;  %s3638_s8 = inlined_call_operand.vmem [shape: f32[2,32,64], index: 8, kind: input, shape index: {}]   ;;  %s3639_s9 = inlined_call_operand.vmem [shape: f32[2,1,64], index: 9, kind: input, shape index: {}]   ;;  %s3640_s10 = inlined_call_operand.vmem [shape: f32[2,64,32], index: 10, kind: input, shape index: {}]   ;;  %s3641_s11 = inlined_call_operand.vmem [shape: f32[2,1,32], index: 11, kind: input, shape index: {}]   ;;  %s3642_s12 = inlined_call_operand.vmem [shape: f32[2,1,32], index: 12, kind: input, shape index: {}]   ;;  %s3643_s13 = inlined_call_operand.vmem [shape: f32[2,1,32], index: 13, kind: input, shape index: {}]   ;;  %s3644_s14 = inlined_call_operand.vmem [shape: f32[32,128], index: 14, kind: input, shape index: {}]   ;;  %s3645_s15 = inlined_call_operand.vmem [shape: f32[1,128], index: 15, kind: input, shape index: {}]   ;;  %s3646_s16 = inlined_call_operand.vmem [shape: f32[2,16,128], index: 16, kind: output, shape index: {}]  }
   0x1   :  { %3647 = sst [smem:[#allocation3_spill]] %s3630_s0 }
   0x2 LB: > { %s2836_s22 = sadd.s32 4294967295, %s3237_s21   ;;  %p2840_p0 = scmp.ge.s32.totalorder %s3237_s21, 1  ;;  %s3237_s21 = sphi %s3340_s21, %s26_s21  }
   0x3   : > { %p566_p1 = scmp.lt.s32.totalorder %s3237_s21, 3 }
   0x5   : > { %p567_p2 = pnand %p2840_p0, %p566_p1 }
   0x6   : > { %p660_p3 = scmp.lt.s32.totalorder (!%p567_p2), %s2836_s22, 1  ;;  %s3648_s30 = sld [smem:[#allocation3_spill]] (!%p567_p2)  ;;  %vm727_vm0 = vcmask (!%p567_p2), 261120   ;;  %v3239_v8 = vmov (!%p567_p2), 0.0   ;;  %vm3240_vm1 = vmmov (!%p567_p2), 0   ;;  %vm817_vm2 = vcmask (!%p567_p2), 64512  }
   0x7   : > { %570 = sbr.rel (%p567_p2) target bundleno = 3363 (0xd23), region = 84  ;;  %2983 = vmatprep.subr.mxu1 (!%p567_p2), %v3239_v8  ;;  %2985 = vmatprep.mubr.msk.f32.mxu1 (!%p567_p2), %vm3240_vm1, %v3239_v8  ;;  %s3241_s20 = smov (!%p567_p2), 64   ;;  %v3414_v20 = vld [vmem:[%s3631_s1] ss:$0 sm:$0xff] (!%p567_p2)  ;;  %v2869_v56 = vld [vmem:[%s3631_s1 + $0x1] ss:$0 sm:$0xff] (!%p567_p2) }
   0x8   : > { %s3242_s25 = smov (!%p567_p2), 96   ;;  %s3243_s26 = smov (!%p567_p2), 88   ;;  %vm1149_vm3 = vcmask (!%p567_p2), 130112   ;;  %vm1320_vm4 = vcmask (!%p567_p2), 195712   ;;  %vm1491_vm5 = vcmask (!%p567_p2), 261312   ;;  %vm2439_vm6 = vcmask (!%p567_p2), 523264  }
   0x9   : > { %s3245_s28 = smov (!%p567_p2), 80   ;;  %s3246_s29 = smov (!%p567_p2), 112  }
   0xa   : > { %s3248_s18 = smov (!%p567_p2), 72  }
   0xe   : > { %s3650_s22 = smov (!%p660_p3, %s2836_s22), 1 }
   0xf   : > { %s3351_s23 = sshll.u32 %s3650_s22, 5  ;;  %s2900_s24 = sshll.u32 %s3650_s22, 4 }
  0x10   : > { %s669_s27 = scalar_lea.vmem %s3632_s2, %s3351_s23  ;;  %s664_s0 = scalar_lea.vmem %s3648_s30, %s2900_s24 }
  0x11   : > { %v716_v0 = vld [vmem:[%s669_s27] sm:$0xff]  ;;  %v717_v1 = vld [vmem:[%s669_s27 + $0x8] sm:$0xff]  ;;  %v718_v2 = vld [vmem:[%s669_s27 + $0x10] sm:$0xff]  ;;  %s672_s19 = scalar_lea.vmem %s3633_s3, %s3650_s22  ;;  %s3247_s30 = smov 104  }
  0x12   : > { %v3115_v3 = vpack.c.bf16 %v717_v1, %v716_v0  ;;  %v719_v4 = vld [vmem:[%s669_s27 + $0x18] sm:$0xff]  ;;  %v3363_v5 = vld [vmem:[%s664_s0] sm:$0xff]  ;;  %v3367_v7 = vld [vmem:[%s664_s0 + $0x8] sm:$0xff]  ;;  %s3244_s27 = smov 120   ;;  %s702_s0 = scalar_lea.vmem %s3641_s11, %s3650_s22 }
  0x13   : > { %v3119_v6 = vpack.c.bf16 %v719_v4, %v718_v2  ;;  %2980 = vmatprep.mubr.msk.f32.mxu0 %vm727_vm0, %v3363_v5  ;;  %v2853_v9 = vld [vmem:[%s672_s19] ss:$0 sm:$0xff]  ;;  %s2904_s19 = sshll.u32 %s3650_s22, 6 }
  0x14   : > { %3116 = vmatprep.subr.bf16.mxu0 %v3115_v3 }
  0x15   : > { %3118 = vmatpush3.bf16.msra.mxu0 %v3115_v3 }
  0x16   : > { %3120 = vmatprep.subr.bf16.mxu0 %v3119_v6 }
  0x19   : > { %3122 = vmatpush3.bf16.msra.mxu0 %v3119_v6 }
  0x1a   : > { %3003 = vmatprep.subr.mxu0 %v3239_v8 }
  0x1c   : > { %2981 = vmatmul.mubr.msk.f32.vlgmr.msra.gmra.mrb[0].mxu0 %vm727_vm0, %v3367_v7 }
  0x1d   : > { %3005 = vmatprep.mubr.msk.f32.mxu0 %vm3240_vm1, %v3239_v8 }
  0xef   : > { %v2982_v10 = vpop.f32.mrb[0].mxu0 }
  0xf0   : > { %v3381_v11 = vadd.f32 %v2982_v10, %v2853_v9  ;;  %v800_v12 = vpop.f32.mrb[1].mxu0 }
  0xf1   : > { %v3383_v13 = vadd.f32 %v2853_v9, %v800_v12 }
  0xf3   : > { %903 = vrot.lane.b32.xlu1 %v3383_v13, %s3241_s20  ;;  %815 = vrot.lane.b32.xlu0 %v3383_v13, %s3242_s25 }
  0xf7   : > { %982 = vrot.lane.b32.xlu1 %v3383_v13, %s3243_s26 }
  0xfb   : > { %980 = vrot.lane.b32.xlu1 %v3383_v13, %s3244_s27 }
  0xff   : > { %1153 = vrot.lane.b32.xlu1 %v3383_v13, %s3245_s28 }
 0x103   : > { %1151 = vrot.lane.b32.xlu1 %v3383_v13, %s3246_s29 }
 0x107   : > { %1322 = vrot.lane.b32.xlu1 %v3383_v13, %s3247_s30 }
 0x165   : > { %v904_v14 = vpop.permute.xlu1 %903  ;;  %v816_v15 = vpop.permute.xlu0 %815 }
 0x166   : > { %2984 = vmatpush3.xpose.msk.msra.mxu1 %vm817_vm2, %v816_v15 }
 0x167   : > { %2988 = vmatprep.subr.mxu1 %v3239_v8 }
 0x169   : > { %v983_v16 = vpop.permute.xlu1 %982  ;;  %2986 = vmatmul.mubr.msk.f32.vlgmr.msra.gmra.mrb[0].mxu1 %vm817_vm2, %v3383_v13 }
 0x16a   : > { %2989 = vmatpush3.msra.mxu1 %v904_v14  ;;  %2990 = vmatprep.mubr.msk.f32.mxu1 %vm3240_vm1, %v3239_v8 }
 0x16b   : > { %2993 = vmatprep.subr.mxu1 %v3239_v8 }
 0x16d   : > { %v981_v17 = vpop.permute.xlu1 %980 }
 0x171   : > { %v1154_v18 = vpop.permute.xlu1 %1153 }
 0x172   : > { %3004 = vmatpush3.xpose.msk.msra.mxu0 %vm817_vm2, %v1154_v18 }
 0x173   : > { %3013 = vmatprep.subr.mxu0 %v3239_v8 }
 0x175   : > { %v1152_v19 = vpop.permute.xlu1 %1151 }
 0x176   : > { %3006 = vmatmul.mubr.msk.f32.vlgmr.msra.gmra.mrb[2].mxu0 %vm817_vm2, %v1152_v19 }
 0x177   : > { %3015 = vmatprep.mubr.msk.f32.mxu0 %vm3240_vm1, %v3239_v8 }
 0x179   : > { %v1323_v33 = vpop.permute.xlu1 %1322 }
 0x23c   : > { %v888_v21 = vpop.f32.mrb[0].mxu1 }
 0x23d   : > { %v889_v22 = vadd.f32 %v3414_v20, %v888_v21  ;;  %v2987_v23 = vpop.f32.mrb[1].mxu1 }
 0x23f   : > { %v892_v24 = vsel %vm817_vm2, %v889_v22, -inf }
 0x240   : > { %893 = vmax.xlane.f32.xlu0 %v892_v24 }
 0x249   : > { %v1225_v25 = vpop.f32.mrb[2].mxu0 }
 0x24a   : > { %v3007_v26 = vpop.f32.mrb[3].mxu0  ;;  %v3424_v27 = vadd.f32 %v3414_v20, %v1225_v25 }
 0x24c   : > { %v1229_v28 = vsel %vm817_vm2, %v3424_v27, -inf }
 0x256   : > { %1324 = vrot.lane.b32.xlu0 %v3383_v13, %s3248_s18 }
 0x25a   : > { %1833 = vrot.lane.b32.xlu0 %v3381_v11, %s3246_s29  ;;  %s3253_s29 = smov 16  }
 0x25e   : > { %2003 = vrot.lane.b32.xlu0 %v3381_v11, %s3247_s30  ;;  %s3254_s30 = smov 24  }
 0x27d   : > { %1230 = vmax.xlane.f32.xlu0 %v1229_v28 }
 0x2cd   : > { %v894_v29 = vpop.xlane.xlu0 %893 }
 0x2ce   : > { %v895_v30 = vsub.f32 %v889_v22, %v894_v29 }
 0x2d0   : > { %v896_v31 = vmul.f32 1.442695, %v895_v30 }
 0x2d1   : > { %v1325_v32 = vpop.permute.xlu0 %1324 }
 0x2d2   : > { %3187 = vpow2.f32 %v896_v31  ;;  %3014 = vmatpush3.xpose.msk.msra.mxu0 %vm817_vm2, %v1325_v32 }
 0x2d3   : > { %3023 = vmatprep.subr.mxu0 %v3239_v8 }
 0x2d5   : > { %3016 = vmatmul.mubr.msk.f32.vlgmr.msra.gmra.mrb[4].mxu0 %vm817_vm2, %v1323_v33  ;;  %v1834_v43 = vpop.permute.xlu0 %1833 }
 0x2d6   : > { %3025 = vmatprep.mubr.msk.f32.mxu0 %vm3240_vm1, %v3239_v8 }
 0x2d9   : > { %v2004_v45 = vpop.permute.xlu0 %2003 }
 0x2dc   : > { %v3188_v34 = vpop.eup %3187 }
 0x2dd   : > { %v898_v35 = vsel %vm817_vm2, %v3188_v34, 0.0 }
 0x2de   : > { %899 = vadd.xlane.f32.xlu1 %v898_v35 }
 0x2ef   : > { %1499 = vrot.lane.b32.xlu1 %v3381_v11, %s3242_s25 }
 0x2f3   : > { %1665 = vrot.lane.b32.xlu1 %v3381_v11, %s3243_s26  ;;  %s3249_s26 = smov 48  }
 0x2f7   : > { %1663 = vrot.lane.b32.xlu1 %v3381_v11, %s3244_s27  ;;  %s3250_s27 = smov 56  }
 0x2fb   : > { %1835 = vrot.lane.b32.xlu1 %v3381_v11, %s3245_s28  ;;  %s3251_s28 = smov 40  }
 0x2ff   : > { %2005 = vrot.lane.b32.xlu1 %v3381_v11, %s3248_s18  ;;  %s677_s18 = scalar_lea.vmem %s3634_s4, %s3351_s23 }
 0x30a   : > { %v1231_v50 = vpop.xlane.xlu0 %1230 }
 0x30b   : > { %v1232_v54 = vsub.f32 %v3424_v27, %v1231_v50 }
 0x30d   : > { %v1233_v58 = vmul.f32 1.442695, %v1232_v54 }
 0x36b   : > { %v900_v36 = vpop.xlane.xlu1 %899 }
 0x36c   : > { %3189 = vrcp.f32 %v900_v36 }
 0x36d   : > { %3191 = vpow2.f32 %v1233_v58 }
 0x36f   : > { %v1500_v37 = vpop.permute.xlu1 %1499 }
 0x370   : > { %3024 = vmatpush3.xpose.msk.msra.mxu0 %vm817_vm2, %v1500_v37 }
 0x371   : > { %3033 = vmatprep.subr.mxu0 %v3239_v8 }
 0x373   : > { %v1666_v38 = vpop.permute.xlu1 %1665  ;;  %3026 = vmatmul.mubr.msk.f32.vlgmr.msra.gmra.mrb[6].mxu0 %vm817_vm2, %v3381_v11 }
 0x374   : > { %3034 = vmatpush3.xpose.msk.msra.mxu0 %vm817_vm2, %v1666_v38  ;;  %3035 = vmatprep.mubr.msk.f32.mxu0 %vm3240_vm1, %v3239_v8 }
 0x375   : > { %3043 = vmatprep.subr.mxu0 %v3239_v8 }
 0x376   : > { %v3190_v39 = vpop.eup %3189 }
 0x377   : > { %v902_v40 = vmul.f32 %v3190_v39, %v3188_v34  ;;  %v1664_v41 = vpop.permute.xlu1 %1663  ;;  %v3481_v19 = vpop.eup %3191 }
 0x378   : > { %3036 = vmatmul.mubr.msk.f32.vlgmr.msra.gmra.mrb[8].mxu0 %vm817_vm2, %v1664_v41  ;;  %v1235_v22 = vsel %vm817_vm2, %v3481_v19, 0.0 }
 0x379   : > { %2991 = vmatmul.mubr.msk.f32.vlgmr.msra.gmra.mrb[2].mxu1 %vm817_vm2, %v902_v40  ;;  %3045 = vmatprep.mubr.msk.f32.mxu0 %vm3240_vm1, %v3239_v8 }
 0x37a   : > { %2994 = vmatpush3.xpose.msk.msra.mxu1 %vm817_vm2, %v983_v16  ;;  %2995 = vmatprep.mubr.msk.f32.mxu1 %vm3240_vm1, %v3239_v8 }
 0x37b   : > { %v1836_v42 = vpop.permute.xlu1 %1835  ;;  %2998 = vmatprep.subr.mxu1 %v3239_v8 }
 0x37c   : > { %3044 = vmatpush3.xpose.msk.msra.mxu0 %vm817_vm2, %v1836_v42 }
 0x37d   : > { %2996 = vmatmul.mubr.msk.f32.vlgmr.msra.gmra.mrb[4].mxu1 %vm817_vm2, %v981_v17  ;;  %3053 = vmatprep.subr.mxu0 %v3239_v8 }
 0x37e   : > { %3000 = vmatprep.mubr.msk.f32.mxu1 %vm3240_vm1, %v3239_v8 }
 0x37f   : > { %v2006_v44 = vpop.permute.xlu1 %2005  ;;  %3046 = vmatmul.mubr.msk.f32.vlgmr.msra.gmra.mrb[10].mxu0 %vm817_vm2, %v1834_v43 }
 0x380   : > { %3054 = vmatpush3.xpose.msk.msra.mxu0 %vm817_vm2, %v2006_v44  ;;  %3055 = vmatprep.mubr.msk.f32.mxu0 %vm3240_vm1, %v3239_v8 }
 0x383   : > { %3056 = vmatmul.mubr.msk.f32.vlgmr.msra.gmra.mrb[12].mxu0 %vm817_vm2, %v2004_v45 }
 0x3a8   : > { %v1396_v46 = vpop.f32.mrb[4].mxu0 }
 0x3a9   : > { %v1397_v47 = vadd.f32 %v3414_v20, %v1396_v46  ;;  %v3017_v48 = vpop.f32.mrb[5].mxu0 }
 0x3ab   : > { %v1400_v49 = vsel %vm817_vm2, %v1397_v47, -inf }
 0x3ac   : > { %1401 = vmax.xlane.f32.xlu0 %v1400_v49 }
 0x439   : > { %v1402_v52 = vpop.xlane.xlu0 %1401 }
 0x43a   : > { %v1403_v55 = vsub.f32 %v1397_v47, %v1402_v52 }
 0x43c   : > { %v1404_v63 = vmul.f32 1.442695, %v1403_v55 }
 0x43e   : > { %3193 = vpow2.f32 %v1404_v63 }
 0x446   : > { %v1571_v51 = vpop.f32.mrb[6].mxu0 }
 0x447   : > { %v3027_v53 = vpop.f32.mrb[7].mxu0  ;;  %v1572_v6 = vadd.f32 %v2869_v56, %v1571_v51 }
 0x448   : > { %v3484_v21 = vpop.eup %3193 }
 0x449   : > { %v1575_v17 = vsel %vm817_vm2, %v1572_v6, -inf  ;;  %v1406_v23 = vsel %vm817_vm2, %v3484_v21, 0.0 }
 0x44b   : > { %v1737_v57 = vpop.f32.mrb[8].mxu0 }
 0x44c   : > { %v1738_v59 = vadd.f32 %v2869_v56, %v1737_v57  ;;  %v975_v60 = vpop.f32.mrb[2].mxu1  ;;  %v3037_v61 = vpop.f32.mrb[9].mxu0 }
 0x44d   : > { %979 = vst.msk [vmem:[#allocation2] sm:$0xff] %vm817_vm2, %v975_v60  ;;  %v2992_v62 = vpop.f32.mrb[3].mxu1 }
 0x44e   : > { %v1741_v0 = vsel %vm817_vm2, %v1738_v59, -inf }
 0x44f   : > { %1742 = vmax.xlane.f32.xlu0 %v1741_v0 }
 0x450   : > { %v1054_v1 = vpop.f32.mrb[4].mxu1 }
 0x451   : > { %v1055_v2 = vadd.f32 %v3414_v20, %v1054_v1  ;;  %v2997_v3 = vpop.f32.mrb[5].mxu1 }
 0x452   : > { %v1907_v4 = vpop.f32.mrb[10].mxu0 }
 0x453   : > { %v3047_v9 = vpop.f32.mrb[11].mxu0  ;;  %v1058_v10 = vsel %vm817_vm2, %v1055_v2, -inf  ;;  %v1908_v14 = vadd.f32 %v2869_v56, %v1907_v4 }
 0x454   : > { %1059 = vmax.xlane.f32.xlu1 %v1058_v10 }
 0x455   : > { %v1911_v20 = vsel %vm817_vm2, %v1908_v14, -inf }
 0x456   : > { %v2077_v12 = vpop.f32.mrb[12].mxu0 }
 0x457   : > { %v2078_v15 = vadd.f32 %v2869_v56, %v2077_v12  ;;  %v3057_v16 = vpop.f32.mrb[13].mxu0 }
 0x458   : > { %1576 = vmax.xlane.f32.xlu1 %v1575_v17 }
 0x459   : > { %v2081_v18 = vsel %vm817_vm2, %v2078_v15, -inf }
 0x45a   : > { %2082 = vmax.xlane.f32.xlu0 %v2081_v18 }
 0x45c   : > { %1912 = vmax.xlane.f32.xlu1 %v1911_v20 }
 0x45e   : > { %1236 = vadd.xlane.f32.xlu0 %v1235_v22  ;;  %v2176_v22 = vld [vmem:[%s677_s18 + $0x8] sm:$0xff] }
 0x460   : > { %1407 = vadd.xlane.f32.xlu1 %v1406_v23 }
 0x4dc   : > { %v1743_v24 = vpop.xlane.xlu0 %1742 }
 0x4dd   : > { %v1744_v25 = vsub.f32 %v1738_v59, %v1743_v24 }
 0x4df   : > { %v1745_v26 = vmul.f32 1.442695, %v1744_v25  ;;  %v2177_v25 = vld [vmem:[%s677_s18 + $0x10] sm:$0xff] }
 0x4e1   : > { %3195 = vpow2.f32 %v1745_v26  ;;  %v1060_v27 = vpop.xlane.xlu1 %1059  ;;  %v2178_v26 = vld [vmem:[%s677_s18 + $0x18] sm:$0xff] }
 0x4e2   : > { %v1061_v45 = vsub.f32 %v1055_v2, %v1060_v27 }
 0x4e4   : > { %v1062_v46 = vmul.f32 1.442695, %v1061_v45 }
 0x4e5   : > { %v1577_v28 = vpop.xlane.xlu1 %1576 }
 0x4e6   : > { %v1578_v29 = vsub.f32 %v1572_v6, %v1577_v28  ;;  %v3127_v28 = vpack.c.bf16 %v2178_v26, %v2177_v25 }
 0x4e7   : > { %v2083_v30 = vpop.xlane.xlu0 %2082 }
 0x4e8   : > { %v1579_v31 = vmul.f32 1.442695, %v1578_v29  ;;  %v2084_v32 = vsub.f32 %v2078_v15, %v2083_v30 }
 0x4e9   : > { %v1913_v33 = vpop.xlane.xlu1 %1912 }
 0x4ea   : > { %3197 = vpow2.f32 %v1579_v31  ;;  %v2085_v34 = vmul.f32 1.442695, %v2084_v32  ;;  %v1914_v35 = vsub.f32 %v1908_v14, %v1913_v33 }
 0x4eb   : > { %v3490_v36 = vpop.eup %3195  ;;  %v1237_v49 = vpop.xlane.xlu0 %1236 }
 0x4ec   : > { %3199 = vpow2.f32 %v2085_v34  ;;  %v1915_v37 = vmul.f32 1.442695, %v1914_v35  ;;  %v1747_v38 = vsel %vm817_vm2, %v3490_v36, 0.0 }
 0x4ed   : > { %1748 = vadd.xlane.f32.xlu1 %v1747_v38  ;;  %v1408_v53 = vpop.xlane.xlu1 %1407 }
 0x4ee   : > { %3201 = vpow2.f32 %v1915_v37 }
 0x4ef   : > { %3203 = vpow2.f32 %v1062_v46 }
 0x4f4   : > { %v3494_v39 = vpop.eup %3197 }
 0x4f5   : > { %v1581_v40 = vsel %vm817_vm2, %v3494_v39, 0.0 }
 0x4f6   : > { %v3498_v41 = vpop.eup %3199  ;;  %1582 = vadd.xlane.f32.xlu0 %v1581_v40 }
 0x4f7   : > { %v2087_v42 = vsel %vm817_vm2, %v3498_v41, 0.0 }
 0x4f8   : > { %v3502_v43 = vpop.eup %3201  ;;  %2088 = vadd.xlane.f32.xlu1 %v2087_v42 }
 0x4f9   : > { %v1917_v44 = vsel %vm817_vm2, %v3502_v43, 0.0  ;;  %v3204_v47 = vpop.eup %3203 }
 0x4fa   : > { %1918 = vadd.xlane.f32.xlu0 %v1917_v44  ;;  %v1064_v48 = vsel %vm817_vm2, %v3204_v47, 0.0 }
 0x509   : > { %1240 = vrot.lane.b32.xlu1 %v3383_v13, %s3249_s26 }
 0x510   : > { %1069 = vrot.lane.b32.xlu0 %v3383_v13, %s3250_s27 }
 0x514   : > { %1586 = vrot.lane.b32.xlu0 %v3381_v11, %s3241_s20  ;;  %s3252_s20 = smov 8  }
 0x518   : > { %1922 = vrot.lane.b32.xlu0 %v3381_v11, %s3249_s26  ;;  %s680_s26 = scalar_lea.vmem %s3635_s5, %s3650_s22 }
 0x52d   : > { %1065 = vadd.xlane.f32.xlu1 %v1064_v48 }
 0x53e   : > { %1411 = vrot.lane.b32.xlu1 %v3383_v13, %s3251_s28 }
 0x542   : > { %1752 = vrot.lane.b32.xlu1 %v3381_v11, %s3250_s27  ;;  %s699_s27 = scalar_lea.vmem %s3640_s10, %s2904_s19 }
 0x543   : > { %v2428_v26 = vld [vmem:[%s699_s27 + $0x20] sm:$0xff] }
 0x546   : > { %2092 = vrot.lane.b32.xlu1 %v3381_v11, %s3251_s28  ;;  %s713_s28 = scalar_lea.vmem %s3646_s16, %s2900_s24 }
 0x57a   : > { %v1749_v54 = vpop.xlane.xlu1 %1748 }
 0x583   : > { %v1583_v50 = vpop.xlane.xlu0 %1582 }
 0x585   : > { %v2089_v55 = vpop.xlane.xlu1 %2088 }
 0x587   : > { %v1919_v51 = vpop.xlane.xlu0 %1918 }
 0x589   : > { %v1241_v56 = vpop.permute.xlu1 %1240 }
 0x58b   : > { %v1070_v52 = vpop.permute.xlu0 %1069 }
 0x58c   : > { %2999 = vmatpush3.msra.mxu1 %v1070_v52 }
 0x58d   : > { %3008 = vmatprep.subr.mxu1 %v3239_v8 }
 0x58f   : > { %v1587_v0 = vpop.permute.xlu0 %1586 }
 0x593   : > { %v1923_v9 = vpop.permute.xlu0 %1922 }
 0x5ba   : > { %v1066_v57 = vpop.xlane.xlu1 %1065 }
 0x5bb   : > { %3205 = vrcp.f32 %v1066_v57 }
 0x5bc   : > { %3207 = vrcp.f32 %v1237_v49 }
 0x5bd   : > { %3209 = vrcp.f32 %v1408_v53 }
 0x5be   : > { %3211 = vrcp.f32 %v1583_v50  ;;  %v1412_v61 = vpop.permute.xlu1 %1411 }
 0x5bf   : > { %3213 = vrcp.f32 %v1749_v54 }
 0x5c0   : > { %3215 = vrcp.f32 %v1919_v51 }
 0x5c1   : > { %3217 = vrcp.f32 %v2089_v55 }
 0x5c2   : > { %v1753_v3 = vpop.permute.xlu1 %1752 }
 0x5c5   : > { %v3206_v13 = vpop.eup %3205 }
 0x5c6   : > { %v1068_v58 = vmul.f32 %v3206_v13, %v3204_v47  ;;  %v3208_v59 = vpop.eup %3207  ;;  %v2093_v14 = vpop.permute.xlu1 %2092 }
 0x5c7   : > { %v1239_v11 = vmul.f32 %v3208_v59, %v3481_v19  ;;  %v3210_v60 = vpop.eup %3209 }
 0x5c8   : > { %3001 = vmatmul.mubr.msk.f32.vlgmr.msra.gmra.mrb[6].mxu1 %vm817_vm2, %v1068_v58  ;;  %v1410_v62 = vmul.f32 %v3210_v60, %v3484_v21  ;;  %v3212_v63 = vpop.eup %3211 }
 0x5c9   : > { %3009 = vmatpush3.msra.mxu1 %v1241_v56  ;;  %3010 = vmatprep.mubr.msk.f32.mxu1 %vm3240_vm1, %v3239_v8  ;;  %v1585_v1 = vmul.f32 %v3212_v63, %v3494_v39  ;;  %v3214_v2 = vpop.eup %3213 }
 0x5ca   : > { %3018 = vmatprep.subr.mxu1 %v3239_v8  ;;  %v1751_v4 = vmul.f32 %v3214_v2, %v3490_v36  ;;  %v3216_v6 = vpop.eup %3215 }
 0x5cb   : > { %v1921_v10 = vmul.f32 %v3216_v6, %v3502_v43  ;;  %v3218_v12 = vpop.eup %3217  ;;  %v2882_v43 = vld [vmem:[%s680_s26] ss:$0 sm:$0xff] }
 0x5cc   : > { %3011 = vmatmul.mubr.msk.f32.vlgmr.msra.gmra.mrb[8].mxu1 %vm817_vm2, %v1239_v11  ;;  %v2091_v15 = vmul.f32 %v3218_v12, %v3498_v41 }
 0x5cd   : > { %3019 = vmatpush3.msra.mxu1 %v1412_v61  ;;  %3020 = vmatprep.mubr.msk.f32.mxu1 %vm3240_vm1, %v3239_v8 }
 0x5ce   : > { %3028 = vmatprep.subr.mxu1 %v3239_v8 }
 0x5d0   : > { %3021 = vmatmul.mubr.msk.f32.vlgmr.msra.gmra.mrb[10].mxu1 %vm817_vm2, %v1410_v62 }
 0x5d1   : > { %3029 = vmatpush3.msra.mxu1 %v1587_v0  ;;  %3030 = vmatprep.mubr.msk.f32.mxu1 %vm3240_vm1, %v3239_v8 }
 0x5d2   : > { %3038 = vmatprep.subr.mxu1 %v3239_v8 }
 0x5d4   : > { %3031 = vmatmul.mubr.msk.f32.vlgmr.msra.gmra.mrb[12].mxu1 %vm817_vm2, %v1585_v1 }
 0x5d5   : > { %3039 = vmatpush3.msra.mxu1 %v1753_v3  ;;  %3040 = vmatprep.mubr.msk.f32.mxu1 %vm3240_vm1, %v3239_v8 }
 0x5d6   : > { %3048 = vmatprep.subr.mxu1 %v3239_v8 }
 0x5d8   : > { %3041 = vmatmul.mubr.msk.f32.vlgmr.msra.gmra.mrb[14].mxu1 %vm817_vm2, %v1751_v4 }
 0x5d9   : > { %3049 = vmatpush3.msra.mxu1 %v1923_v9  ;;  %3050 = vmatprep.mubr.msk.f32.mxu1 %vm3240_vm1, %v3239_v8 }
 0x5da   : > { %3058 = vmatprep.subr.mxu1 %v3239_v8 }
 0x5dc   : > { %3051 = vmatmul.mubr.msk.f32.vlgmr.msra.gmra.mrb[16].mxu1 %vm817_vm2, %v1921_v10 }
 0x5dd   : > { %3059 = vmatpush3.msra.mxu1 %v2093_v14  ;;  %3060 = vmatprep.mubr.msk.f32.mxu1 %vm3240_vm1, %v3239_v8  ;;  %v2175_v8 = vld [vmem:[%s677_s18] sm:$0xff]  ;;  %s686_s18 = scalar_lea.vmem %s3637_s7, %s3650_s22 }
 0x5de   : > { %v3123_v23 = vpack.c.bf16 %v2176_v22, %v2175_v8  ;;  %v2886_v14 = vld [vmem:[%s686_s18] ss:$0 sm:$0xff]  ;;  %v2425_v8 = vld [vmem:[%s699_s27 + $0x8] sm:$0xff]  ;;  %s708_s18 = scalar_lea.vmem %s3643_s13, %s3650_s22 }
 0x5e0   : > { %3061 = vmatmul.mubr.msk.f32.vlgmr.msra.gmra.mrb[18].mxu1 %vm817_vm2, %v2091_v15  ;;  %3124 = vmatprep.subr.bf16.mxu0 %v3123_v23 }
 0x5e1   : > { %3126 = vmatpush3.bf16.msra.mxu0 %v3123_v23  ;;  %v2426_v23 = vld [vmem:[%s699_s27 + $0x10] sm:$0xff] }
 0x5e2   : > { %3128 = vmatprep.subr.bf16.mxu0 %v3127_v28 }
 0x5e5   : > { %3130 = vmatpush3.bf16.msra.mxu0 %v3127_v28 }
 0x69b   : > { %v1141_v16 = vpop.f32.mrb[6].mxu1 }
 0x69c   : > { %1146 = vrot.lane.b32.xlu0 %v1141_v16, %s3252_s20  ;;  %v3002_v17 = vpop.f32.mrb[7].mxu1 }
 0x69f   : > { %v1312_v18 = vpop.f32.mrb[8].mxu1 }
 0x6a0   : > { %1317 = vrot.lane.b32.xlu1 %v1312_v18, %s3253_s29  ;;  %v3012_v19 = vpop.f32.mrb[9].mxu1 }
 0x6a3   : > { %v1483_v20 = vpop.f32.mrb[10].mxu1 }
 0x6a4   : > { %1488 = vrot.lane.b32.xlu1 %v1483_v20, %s3254_s30  ;;  %v3022_v21 = vpop.f32.mrb[11].mxu1 }
 0x6a5   : > { %v2424_v21 = vld [vmem:[%s699_s27] sm:$0xff] }
 0x6a6   : > { %v3139_v22 = vpack.c.bf16 %v2425_v8, %v2424_v21 }
 0x6a7   : > { %v1658_v24 = vpop.f32.mrb[12].mxu1 }
 0x6a8   : > { %1662 = vst.msk [vmem:[#allocation2 + $0x8] sm:$0xff] %vm817_vm2, %v1658_v24  ;;  %v3032_v27 = vpop.f32.mrb[13].mxu1  ;;  %3140 = vmatprep.subr.bf16.mxu0 %v3139_v22  ;;  %v2427_v24 = vld [vmem:[%s699_s27 + $0x18] sm:$0xff] }
 0x6a9   : > { %v3143_v25 = vpack.c.bf16 %v2427_v24, %v2426_v23  ;;  %v2429_v27 = vld [vmem:[%s699_s27 + $0x28] sm:$0xff] }
 0x6aa   : > { %v3147_v28 = vpack.c.bf16 %v2429_v27, %v2428_v26  ;;  %v2894_v27 = vld [vmem:[%s708_s18] ss:$0 sm:$0xff] }
 0x6ab   : > { %v1824_v29 = vpop.f32.mrb[14].mxu1 }
 0x6ac   : > { %1829 = vrot.lane.b32.xlu0 %v1824_v29, %s3252_s20  ;;  %v3042_v30 = vpop.f32.mrb[15].mxu1  ;;  %s691_s20 = scalar_lea.vmem %s3638_s8, %s3351_s23  ;;  %v2430_v29 = vld [vmem:[%s699_s27 + $0x30] sm:$0xff]  ;;  %s694_s23 = scalar_lea.vmem %s3639_s9, %s3650_s22 }
 0x6ad   : > { %v2315_v11 = vld [vmem:[%s691_s20 + $0x8] sm:$0xff]  ;;  %v2316_v61 = vld [vmem:[%s691_s20 + $0x10] sm:$0xff]  ;;  %v2317_v62 = vld [vmem:[%s691_s20 + $0x18] sm:$0xff] }
 0x6ae   : > { %v3135_v63 = vpack.c.bf16 %v2317_v62, %v2316_v61  ;;  %v2431_v30 = vld [vmem:[%s699_s27 + $0x38] sm:$0xff] }
 0x6af   : > { %v1994_v31 = vpop.f32.mrb[16].mxu1 }
 0x6b0   : > { %1999 = vrot.lane.b32.xlu0 %v1994_v31, %s3253_s29  ;;  %v3052_v32 = vpop.f32.mrb[17].mxu1  ;;  %v3151_v31 = vpack.c.bf16 %v2431_v30, %v2430_v29 }
 0x6b1   : > { %v2887_v32 = vld [vmem:[%s694_s23] ss:$0 sm:$0xff] }
 0x6b3   : > { %v2164_v33 = vpop.f32.mrb[18].mxu1 }
 0x6b4   : > { %2169 = vrot.lane.b32.xlu1 %v2164_v33, %s3254_s30  ;;  %v3062_v34 = vpop.f32.mrb[19].mxu1  ;;  %s683_s30 = scalar_lea.vmem %s3636_s6, %s3650_s22 }
 0x6b5   : > { %v2885_v10 = vld [vmem:[%s683_s30] ss:$0 sm:$0xff]  ;;  %s705_s30 = scalar_lea.vmem %s3642_s12, %s3650_s22 }
 0x6b6   : > { %v2893_v23 = vld [vmem:[%s705_s30] ss:$0 sm:$0xff] }
 0x70e   : > { %v1147_v35 = vpop.permute.xlu0 %1146 }
 0x70f   : > { %1150 = vst.msk [vmem:[#allocation2] sm:$0xff] %vm1149_vm3, %v1147_v35 }
 0x712   : > { %v1318_v36 = vpop.permute.xlu1 %1317 }
 0x713   : > { %1321 = vst.msk [vmem:[#allocation2] sm:$0xff] %vm1320_vm4, %v1318_v36 }
 0x716   : > { %v1489_v37 = vpop.permute.xlu1 %1488 }
 0x717   : > { %1492 = vst.msk [vmem:[#allocation2] sm:$0xff] %vm1491_vm5, %v1489_v37 }
 0x71e   : > { %v1830_v38 = vpop.permute.xlu0 %1829  ;;  %v2173_v39 = vld [vmem:[#allocation2] sm:$0xff] }
 0x71f   : > { %1832 = vst.msk [vmem:[#allocation2 + $0x8] sm:$0xff] %vm1149_vm3, %v1830_v38  ;;  %3071 = vmatprep.mubr.msk.f32.mxu0 %vm727_vm0, %v2173_v39 }
 0x722   : > { %v2000_v40 = vpop.permute.xlu0 %1999 }
 0x723   : > { %2002 = vst.msk [vmem:[#allocation2 + $0x8] sm:$0xff] %vm1320_vm4, %v2000_v40 }
 0x726   : > { %v2170_v41 = vpop.permute.xlu1 %2169 }
 0x727   : > { %2172 = vst.msk [vmem:[#allocation2 + $0x8] sm:$0xff] %vm1491_vm5, %v2170_v41 }
 0x72e   : > { %v2174_v42 = vld [vmem:[#allocation2 + $0x8] sm:$0xff] }
 0x72f   : > { %3072 = vmatmul.mubr.msk.f32.vlgmr.msra.gmra.mrb[14].mxu0 %vm727_vm0, %v2174_v42 }
 0x730   : > { %3142 = vmatpush3.bf16.msra.mxu0 %v3139_v22 }
 0x731   : > { %3144 = vmatprep.subr.bf16.mxu0 %v3143_v25 }
 0x734   : > { %3146 = vmatpush3.bf16.msra.mxu0 %v3143_v25 }
 0x735   : > { %3148 = vmatprep.subr.bf16.mxu0 %v3147_v28 }
 0x738   : > { %3150 = vmatpush3.bf16.msra.mxu0 %v3147_v28 }
 0x739   : > { %3152 = vmatprep.subr.bf16.mxu0 %v3151_v31 }
 0x73c   : > { %3154 = vmatpush3.bf16.msra.mxu0 %v3151_v31 }
 0x802   : > { %v3073_v44 = vpop.f32.mrb[14].mxu0 }
 0x803   : > { %v2264_v45 = vadd.f32 %v3073_v44, %v2882_v43  ;;  %v2258_v46 = vpop.f32.mrb[15].mxu0 }
 0x804   : > { %v2259_v47 = vadd.f32 %v2882_v43, %v2258_v46 }
 0x805   : > { %v2268_v48 = vadd.f32 %v2264_v45, %v3367_v7  ;;  %v2314_v7 = vld [vmem:[%s691_s20] sm:$0xff] }
 0x806   : > { %v2267_v49 = vadd.f32 %v2259_v47, %v3363_v5  ;;  %v3131_v60 = vpack.c.bf16 %v2315_v11, %v2314_v7 }
 0x807   : > { %v2274_v50 = vsel %vm727_vm0, %v2268_v48, 0.0 }
 0x808   : > { %2275 = vadd.xlane.f32.xlu1 %v2274_v50  ;;  %v2271_v51 = vsel %vm727_vm0, %v2267_v49, 0.0  ;;  %3132 = vmatprep.subr.bf16.mxu1 %v3131_v60 }
 0x809   : > { %2272 = vadd.xlane.f32.xlu0 %v2271_v51  ;;  %3134 = vmatpush3.bf16.msra.mxu1 %v3131_v60 }
 0x80a   : > { %3136 = vmatprep.subr.bf16.mxu1 %v3135_v63 }
 0x80d   : > { %3138 = vmatpush3.bf16.msra.mxu1 %v3135_v63 }
 0x895   : > { %v2276_v52 = vpop.xlane.xlu1 %2275 }
 0x896   : > { %v2279_v53 = vmul.f32 0.03125, %v2276_v52  ;;  %v2273_v54 = vpop.xlane.xlu0 %2272 }
 0x897   : > { %v2278_v55 = vmul.f32 0.03125, %v2273_v54 }
 0x898   : > { %v2281_v56 = vsub.f32 %v2268_v48, %v2279_v53 }
 0x899   : > { %v2280_v57 = vsub.f32 %v2267_v49, %v2278_v55  ;;  %v2890_v55 = vld [vmem:[%s702_s0] ss:$0 sm:$0xff] }
 0x89a   : > { %v2283_v59 = vmul.f32 %v2281_v56, %v2281_v56 }
 0x89b   : > { %v2282_v13 = vmul.f32 %v2280_v57, %v2280_v57 }
 0x89c   : > { %v2287_v5 = vsel %vm727_vm0, %v2283_v59, 0.0 }
 0x89d   : > { %v2284_v58 = vsel %vm727_vm0, %v2282_v13, 0.0 }
 0x89e   : > { %2285 = vadd.xlane.f32.xlu0 %v2284_v58 }
 0x8a2   : > { %2288 = vadd.xlane.f32.xlu0 %v2287_v5 }
 0x92b   : > { %v2286_v0 = vpop.xlane.xlu0 %2285 }
 0x92c   : > { %v2290_v1 = vmul.f32 0.03125, %v2286_v0 }
 0x92e   : > { %v2292_v2 = vadd.f32 1e-12, %v2290_v1 }
 0x92f   : > { %v2289_v3 = vpop.xlane.xlu0 %2288 }
 0x930   : > { %3219 = vrsqrt.f32 %v2292_v2  ;;  %v2291_v4 = vmul.f32 0.03125, %v2289_v3 }
 0x932   : > { %v2293_v6 = vadd.f32 1e-12, %v2291_v4 }
 0x934   : > { %3221 = vrsqrt.f32 %v2293_v6 }
 0x93a   : > { %v3220_v9 = vpop.eup %3219 }
 0x93b   : > { %v2296_v12 = vmul.f32 %v3220_v9, %v2280_v57  ;;  %v2567_v9 = vld [vmem:[%s3644_s14] sm:$0xff] }
 0x93d   : > { %v2304_v15 = vmul.f32 %v2885_v10, %v2296_v12 }
 0x93e   : > { %v3222_v16 = vpop.eup %3221 }
 0x93f   : > { %v2297_v17 = vmul.f32 %v3222_v16, %v2281_v56  ;;  %v3575_v18 = vadd.f32 %v2886_v14, %v2304_v15  ;;  %v2570_v15 = vld [vmem:[%s3644_s14 + $0x18] sm:$0xff] }
 0x941   : > { %v2305_v19 = vmul.f32 %v2885_v10, %v2297_v17  ;;  %3082 = vmatprep.mubr.msk.f32.mxu1 %vm727_vm0, %v3575_v18  ;;  %v2568_v10 = vld [vmem:[%s3644_s14 + $0x8] sm:$0xff] }
 0x942   : > { %v3155_v12 = vpack.c.bf16 %v2568_v10, %v2567_v9 }
 0x943   : > { %v2313_v20 = vadd.f32 %v2886_v14, %v2305_v19  ;;  %v2569_v14 = vld [vmem:[%s3644_s14 + $0x10] sm:$0xff] }
 0x944   : > { %3156 = vmatprep.subr.bf16.mxu1 %v3155_v12  ;;  %v3159_v16 = vpack.c.bf16 %v2570_v15, %v2569_v14 }
 0x945   : > { %3083 = vmatmul.mubr.msk.f32.vlgmr.msra.gmra.mrb[20].mxu1 %vm727_vm0, %v2313_v20 }
 0x946   : > { %3158 = vmatpush3.bf16.msra.mxu1 %v3155_v12 }
 0x947   : > { %3160 = vmatprep.subr.bf16.mxu1 %v3159_v16 }
 0x94a   : > { %3162 = vmatpush3.bf16.msra.mxu1 %v3159_v16 }
 0xa18   : > { %v3084_v33 = vpop.f32.mrb[20].mxu1 }
 0xa19   : > { %v2403_v34 = vadd.f32 %v3084_v33, %v2887_v32  ;;  %v2397_v35 = vpop.f32.mrb[21].mxu1 }
 0xa1a   : > { %v2398_v36 = vadd.f32 %v2887_v32, %v2397_v35  ;;  %v2895_v32 = vld [vmem:[%s3645_s15] ss:$0 sm:$0xff] }
 0xa1b   : > { %v2407_v37 = vmul.f32 %v2403_v34, %v2403_v34 }
 0xa1c   : > { %v2406_v38 = vmul.f32 %v2398_v36, %v2398_v36 }
 0xa1d   : > { %v2409_v39 = vmul.f32 %v2407_v37, %v2403_v34 }
 0xa1e   : > { %v2408_v40 = vmul.f32 %v2406_v38, %v2398_v36 }
 0xa1f   : > { %v2411_v41 = vmul.f32 0.044715, %v2409_v39 }
 0xa20   : > { %v2410_v42 = vmul.f32 0.044715, %v2408_v40 }
 0xa21   : > { %v2413_v43 = vadd.f32 %v2411_v41, %v2403_v34 }
 0xa22   : > { %v2412_v44 = vadd.f32 %v2410_v42, %v2398_v36 }
 0xa23   : > { %v2415_v45 = vmul.f32 0.7978846, %v2413_v43 }
 0xa24   : > { %v2414_v46 = vmul.f32 0.7978846, %v2412_v44 }
 0xa25   : > { %3223 = vtanh.f32 %v2415_v45 }
 0xa26   : > { %3225 = vtanh.f32 %v2414_v46 }
 0xa2f   : > { %v3224_v47 = vpop.eup %3223 }
 0xa30   : > { %v3226_v48 = vpop.eup %3225  ;;  %v2419_v49 = vadd.f32 1.0, %v3224_v47 }
 0xa31   : > { %v2418_v50 = vadd.f32 1.0, %v3226_v48 }
 0xa32   : > { %v2421_v51 = vmul.f32 0.5, %v2419_v49 }
 0xa33   : > { %v2420_v52 = vmul.f32 0.5, %v2418_v50 }
 0xa34   : > { %v2423_v54 = vmul.f32 %v2421_v51, %v2403_v34 }
 0xa35   : > { %v2422_v53 = vmul.f32 %v2420_v52, %v2398_v36 }
 0xa37   : > { %3101 = vmatprep.mubr.msk.f32.mxu0 %vm2439_vm6, %v2422_v53 }
 0xa38   : > { %3102 = vmatmul.mubr.msk.f32.vlgmr.msra.gmra.mrb[16].mxu0 %vm2439_vm6, %v2423_v54 }
 0xb0b   : > { %v3103_v56 = vpop.f32.mrb[16].mxu0 }
 0xb0c   : > { %v2518_v57 = vadd.f32 %v3103_v56, %v2890_v55  ;;  %v2512_v13 = vpop.f32.mrb[17].mxu0 }
 0xb0d   : > { %v2513_v58 = vadd.f32 %v2890_v55, %v2512_v13 }
 0xb0e   : > { %v2522_v59 = vadd.f32 %v2518_v57, %v2313_v20 }
 0xb0f   : > { %v2521_v5 = vadd.f32 %v2513_v58, %v3575_v18 }
 0xb10   : > { %v2528_v7 = vsel %vm727_vm0, %v2522_v59, 0.0 }
 0xb11   : > { %2529 = vadd.xlane.f32.xlu0 %v2528_v7  ;;  %v2525_v11 = vsel %vm727_vm0, %v2521_v5, 0.0 }
 0xb12   : > { %2526 = vadd.xlane.f32.xlu1 %v2525_v11 }
 0xb9e   : > { %v2530_v60 = vpop.xlane.xlu0 %2529 }
 0xb9f   : > { %v2532_v61 = vmul.f32 0.03125, %v2530_v60  ;;  %v2527_v62 = vpop.xlane.xlu1 %2526 }
 0xba0   : > { %v2531_v63 = vmul.f32 0.03125, %v2527_v62 }
 0xba1   : > { %v2534_v0 = vsub.f32 %v2522_v59, %v2532_v61 }
 0xba2   : > { %v2533_v1 = vsub.f32 %v2521_v5, %v2531_v63 }
 0xba3   : > { %v2536_v2 = vmul.f32 %v2534_v0, %v2534_v0 }
 0xba4   : > { %v2535_v3 = vmul.f32 %v2533_v1, %v2533_v1 }
 0xba5   : > { %v2540_v4 = vsel %vm727_vm0, %v2536_v2, 0.0 }
 0xba6   : > { %2541 = vadd.xlane.f32.xlu0 %v2540_v4  ;;  %v2537_v6 = vsel %vm727_vm0, %v2535_v3, 0.0 }
 0xba7   : > { %2538 = vadd.xlane.f32.xlu1 %v2537_v6 }
 0xc33   : > { %v2542_v17 = vpop.xlane.xlu0 %2541 }
 0xc34   : > { %v2544_v18 = vmul.f32 0.03125, %v2542_v17  ;;  %v2539_v19 = vpop.xlane.xlu1 %2538 }
 0xc35   : > { %v2543_v20 = vmul.f32 0.03125, %v2539_v19 }
 0xc36   : > { %v2546_v21 = vadd.f32 1e-12, %v2544_v18 }
 0xc37   : > { %v2545_v8 = vadd.f32 1e-12, %v2543_v20 }
 0xc38   : > { %3227 = vrsqrt.f32 %v2546_v21 }
 0xc39   : > { %3229 = vrsqrt.f32 %v2545_v8 }
 0xc42   : > { %v3228_v22 = vpop.eup %3227 }
 0xc43   : > { %v3230_v24 = vpop.eup %3229  ;;  %v2550_v25 = vmul.f32 %v3228_v22, %v2534_v0 }
 0xc44   : > { %v2549_v26 = vmul.f32 %v3230_v24, %v2533_v1 }
 0xc45   : > { %v2558_v28 = vmul.f32 %v2893_v23, %v2550_v25 }
 0xc46   : > { %v2557_v29 = vmul.f32 %v2893_v23, %v2549_v26 }
 0xc47   : > { %v2566_v31 = vadd.f32 %v2894_v27, %v2558_v28 }
 0xc48   : > { %v2565_v30 = vadd.f32 %v2894_v27, %v2557_v29 }
 0xc4a   : > { %3112 = vmatprep.mubr.msk.f32.mxu1 %vm727_vm0, %v2565_v30 }
 0xc4b   : > { %3113 = vmatmul.mubr.msk.f32.vlgmr.msra.gmra.mrb[22].mxu1 %vm727_vm0, %v2566_v31 }
 0xd1e   : > { %v3114_v33 = vpop.f32.mrb[22].mxu1 }
 0xd1f   : > { %v2656_v34 = vadd.f32 %v3114_v33, %v2895_v32  ;;  %v2650_v35 = vpop.f32.mrb[23].mxu1 }
 0xd20   : > { %v2651_v36 = vadd.f32 %v2895_v32, %v2650_v35 }
 0xd21   : > { %2660 = vst [vmem:[%s713_s28 + $0x8] sm:$0xff] %v2656_v34 }
 0xd22   : > { %2659 = vst [vmem:[%s713_s28] sm:$0xff] %v2651_v36 }
 0xd23 PF: > { %s26_s21 = sadd.s32 1, %s3237_s21  }
 0xd24   : > { %p23_p4 = scmp.ge.s32.totalorder %s26_s21, 4  }
 0xd26   :  { %25 = sbr.rel (!%p23_p4) target bundleno = 2 (0x2), region = 150 }

</bundles_post_ra>
